<compile_context>
chip_gen: v7x
topology: tpu7x:2x2x1
jax: 0.10.0
libtpu: 0.0.40
codegen_flags: <defaults>
</compile_context>

<pallas_src>
import math

import jax
import jax.numpy as jnp
from jax import lax
from jax.experimental import pallas as pl
from jax.experimental.pallas import tpu as pltpu

NEG_SLOPE = 0.01      # nn.LeakyReLU() default
_SPLIT_MIN = 128      # parts with >= this many channels use per-tap (split-K) dots

# Layer plan: (output name, input parts in channel-concat order, C_out, activation)
_PLAN = (
    ("x1",  ("in",),      32,  "leaky"),    # down_1
    ("x2",  ("x1",),      64,  "leaky"),    # down_2
    ("x3",  ("x2",),      128, "leaky"),    # down_3
    ("b1",  ("x3",),      256, "leaky"),    # bottleneck conv_1
    ("b2",  ("b1",),      256, "leaky"),    # bottleneck conv_2
    ("u1",  ("b2", "x3"), 128, "leaky"),    # up_1  (cat([h, x3], dim=1))
    ("u2",  ("u1", "x2"), 64,  "leaky"),    # up_2  (cat([h, x2], dim=1))
    ("u3",  ("u2", "x1"), 32,  "leaky"),    # up_3  (cat([h, x1], dim=1))
    ("out", ("u3",),      2,   "sigmoid"),  # predictor + sigmoid
)
_CH = {"in": 3}
for _name, _parts, _cout, _act in _PLAN:
    _CH[_name] = _cout


# ---------------------------------------------------------------------------
# Fused whole-network kernel (generated per row-tile size).
# ---------------------------------------------------------------------------
def _make_kernel(row_tile):
    nxt_shift = row_tile - 1      # roll by -1 == roll by R-1 (keep shift non-negative)

    def kernel(*refs):
        # refs = (x, keep_prev, keep_next, <per-part weights / per-layer biases...>, out)
        x_ref, kp_ref, kn_ref = refs[0], refs[1], refs[2]
        o_ref = refs[-1]
        wrefs = refs[3:-1]

        kp = kp_ref[...]                       # (R, 1) f32: row has a valid left neighbour
        kn = kn_ref[...]                       # (R, 1) f32: row has a valid right neighbour
        acts = {"in": x_ref[...]}              # f32 activations, channel-last
        bf_cache = {}                          # each activation cast to bf16 at most once

        def as_bf16(name):
            if name not in bf_cache:
                bf_cache[name] = acts[name].astype(jnp.bfloat16)
            return bf_cache[name]

        wi = 0
        for name, parts, c_out, act in _PLAN:
            contribs = []
            for p in parts:
                h = acts[p]
                c_p = h.shape[-1]
                w_ref = wrefs[wi]
                wi += 1
                # +/-1 taps via XLU roll (no misaligned-slice copies).  Rows that
                # wrap or cross a sequence boundary are zeroed by kp/kn (tiles
                # always start at sequence boundaries).
                prev = pltpu.roll(h, shift=1, axis=0)
                nxt = pltpu.roll(h, shift=nxt_shift, axis=0)

                if c_p >= _SPLIT_MIN:
                    # Wide part: three accumulating per-tap dots, no LHS concat.
                    # w_ref: (3, c_p, c_out) bf16.  Mask on the narrower side.
                    def tap_dot(t, shifted, mask, _w=w_ref, _co=c_out, _cp=c_p):
                        if _co <= _cp:
                            y = jnp.dot(shifted.astype(jnp.bfloat16), _w[t],
                                        preferred_element_type=jnp.float32)
                            return mask * y
                        return jnp.dot((mask * shifted).astype(jnp.bfloat16), _w[t],
                                       preferred_element_type=jnp.float32)

                    contribs.append(tap_dot(0, prev, kp))
                    contribs.append(jnp.dot(as_bf16(p), w_ref[1],
                                            preferred_element_type=jnp.float32))
                    contribs.append(tap_dot(2, nxt, kn))
                else:
                    # Narrow part: fuse the 3 taps on the contraction axis (1 dot).
                    # w_ref: (3*c_p, c_out) bf16.
                    lhs = jnp.concatenate([prev * kp, h, nxt * kn], axis=-1)
                    contribs.append(jnp.dot(lhs.astype(jnp.bfloat16), w_ref[...],
                                            preferred_element_type=jnp.float32))

            b_ref = wrefs[wi]
            wi += 1
            y = contribs[0]
            for extra in contribs[1:]:
                y = y + extra
            y = y + b_ref[...]                                # (1, c_out) f32 bias
            if act == "leaky":
                y = jnp.maximum(y, NEG_SLOPE * y)             # 2 VALU ops
            else:
                y = 1.0 / (1.0 + jnp.exp(-y))                 # exact sigmoid (2 lanes only)
            acts[name] = y

        assert wi == len(wrefs)
        o_ref[...] = acts[_PLAN[-1][0]].astype(o_ref.dtype)

    return kernel


# ---------------------------------------------------------------------------
# Wrapper helpers.
# ---------------------------------------------------------------------------
_PER_ROW_VMEM = 8 * 1024   # rough peak live f32 activations + temporaries per row


def _vmem_limit_bytes():
    try:
        cap = int(pltpu.get_tpu_info().vmem_capacity_bytes)   # 64 MiB v7x, 128 MiB v5e/v6e
    except Exception:
        cap = 64 * 1024 * 1024
    # leave headroom for double-buffered in/out blocks + compiler scratch
    return max(32 * 1024 * 1024, min(cap * 3 // 4, 100 * 1024 * 1024))


def _pick_row_tile(n, length, target_rows):
    """batch_tile, padded batch size.  Tiles always hold whole sequences and a
    multiple-of-8 number of rows (batch is padded; a sequence is never split)."""
    need = 8 // math.gcd(length, 8)              # batch_tile must be a multiple of this
    bt_max = -(-n // need) * need                # whole (padded) batch in one tile
    bt = max(1, target_rows // max(1, length))
    if n >= 4 * need:                            # keep >= 4 tiles when the batch allows
        bt = min(bt, n // 4)                     # (v7x has 2 TensorCores)
    elif n >= 2 * need:
        bt = min(bt, n // 2)
    bt = max(need, (bt // need) * need)
    bt = min(bt, bt_max)
    n_pad = -(-n // bt) * bt
    return bt, n_pad


def _prep_params(params):
    """Torch-layout (C_out, C_in, 3) conv weights -> per-part bf16 MXU slabs + f32 biases.
    Wide parts get a per-tap (3, c_p, c_out) slab; narrow parts a fused (3*c_p, c_out)."""
    flat = []
    for (name, parts, c_out, _), (w, b) in zip(_PLAN, params):
        w = jnp.asarray(w, jnp.float32)
        off = 0
        for p in parts:
            c_p = _CH[p]
            wp = jnp.transpose(w[:, off:off + c_p, :], (2, 1, 0))     # (3, c_p, c_out)
            if c_p >= _SPLIT_MIN:
                flat.append(wp.astype(jnp.bfloat16))
            else:
                flat.append(wp.reshape(3 * c_p, c_out).astype(jnp.bfloat16))
            off += c_p
        flat.append(jnp.asarray(b, jnp.float32).reshape(1, c_out))
    return flat


def inpaintnet_forward(x, m, params, *, target_rows=None):
    """x: (N, L, 2) f32, m: (N, L, 1) f32 -> (N, L, 2) f32 (same layout as PyTorch).
    params: list of 9 (w, b) with w in PyTorch Conv1d layout (C_out, C_in, 3)."""
    n, length, _ = x.shape

    vmem_limit = _vmem_limit_bytes()
    if target_rows is None:
        # Feed the MXU thousands of rows per grid step, bounded by VMEM headroom.
        target_rows = int(min(4096, max(512, (vmem_limit // 3) // _PER_ROW_VMEM)))

    # torch.cat([x, m], dim=2); stay channel-last end-to-end (no transposes).
    feats = jnp.concatenate([x, m], axis=2).astype(jnp.float32)       # (N, L, 3)

    bt, n_pad = _pick_row_tile(n, length, target_rows)
    if n_pad != n:
        feats = jnp.pad(feats, ((0, n_pad - n), (0, 0), (0, 0)))
    rows = n_pad * length
    row_tile = bt * length
    # In-register 'same' padding (roll + mask) is only valid when every tile starts
    # at a sequence boundary and the row tile is sublane-aligned:
    assert row_tile % length == 0 and rows % row_tile == 0 and row_tile % 8 == 0

    x2d = feats.reshape(rows, 3)                                      # free reshape

    # Per-row halo masks (pattern repeats per sequence inside a tile).
    l_idx = jnp.tile(jnp.arange(length, dtype=jnp.int32), bt)
    keep_prev = (l_idx != 0).astype(jnp.float32)[:, None]             # (row_tile, 1)
    keep_next = (l_idx != length - 1).astype(jnp.float32)[:, None]    # (row_tile, 1)

    flat = _prep_params(params)

    def _const_spec(a):
        zeros = (0,) * a.ndim
        return pl.BlockSpec(a.shape, lambda i, _z=zeros: _z)          # resident across tiles

    in_specs = ([pl.BlockSpec((row_tile, 3), lambda i: (i, 0)),
                 _const_spec(keep_prev), _const_spec(keep_next)]
                + [_const_spec(a) for a in flat])

    out2d = pl.pallas_call(
        _make_kernel(row_tile),
        out_shape=jax.ShapeDtypeStruct((rows, 2), jnp.float32),
        grid_spec=pltpu.PrefetchScalarGridSpec(
            num_scalar_prefetch=0,
            grid=(rows // row_tile,),
            in_specs=in_specs,
            out_specs=pl.BlockSpec((row_tile, 2), lambda i: (i, 0)),
        ),
        compiler_params=pltpu.CompilerParams(
            # "parallel" shards row tiles across TensorCores where available and is
            # portable to single-TC chips (CORE_PARALLEL is an alternative on v7x).
            dimension_semantics=("parallel",),
            vmem_limit_bytes=vmem_limit,
        ),
    )(x2d, keep_prev, keep_next, *flat)

    return out2d.reshape(n_pad, length, 2)[:n]                        # (N, L, 2)


# ---------------------------------------------------------------------------
# Pure-JAX reference (mirrors the PyTorch forward exactly, NCL internally).
# ---------------------------------------------------------------------------
def _leaky_ref(x):
    return jnp.where(x > 0, x, NEG_SLOPE * x)


def _conv1d_same_ref(h_ncl, w, b):
    y = lax.conv_general_dilated(
        h_ncl, w, window_strides=(1,), padding="SAME",
        dimension_numbers=("NCH", "OIH", "NCH"),
        precision=lax.Precision.HIGHEST)
    return y + b[None, :, None]


def inpaintnet_reference(x, m, params):
    (wd1, bd1), (wd2, bd2), (wd3, bd3), (wb1, bb1), (wb2, bb2), \
        (wu1, bu1), (wu2, bu2), (wu3, bu3), (wpr, bpr) = params
    h = jnp.concatenate([x, m], axis=2)             # (N, L, 3)
    h = jnp.transpose(h, (0, 2, 1))                 # (N, 3, L)
    x1 = _leaky_ref(_conv1d_same_ref(h, wd1, bd1))
    x2 = _leaky_ref(_conv1d_same_ref(x1, wd2, bd2))
    x3 = _leaky_ref(_conv1d_same_ref(x2, wd3, bd3))
    h = _leaky_ref(_conv1d_same_ref(x3, wb1, bb1))
    h = _leaky_ref(_conv1d_same_ref(h, wb2, bb2))
    h = _leaky_ref(_conv1d_same_ref(jnp.concatenate([h, x3], axis=1), wu1, bu1))
    h = _leaky_ref(_conv1d_same_ref(jnp.concatenate([h, x2], axis=1), wu2, bu2))
    h = _leaky_ref(_conv1d_same_ref(jnp.concatenate([h, x1], axis=1), wu3, bu3))
    y = jax.nn.sigmoid(_conv1d_same_ref(h, wpr, bpr))
    return jnp.transpose(y, (0, 2, 1))              # (N, L, 2)


def init_params(key):
    params = []
    for name, parts, c_out, _ in _PLAN:
        c_in = sum(_CH[p] for p in parts)
        key, kw, kb = jax.random.split(key, 3)
        scale = (3.0 * c_in) ** -0.5
        w = jax.random.normal(kw, (c_out, c_in, 3), dtype=jnp.float32) * scale
        b = jax.random.normal(kb, (c_out,), dtype=jnp.float32) * 0.1
        params.append((w, b))
    return params


if __name__ == "__main__":
    key = jax.random.PRNGKey(0)
    N, L = 2, 16
    k_x, k_m, k_p = jax.random.split(key, 3)
    x = jax.random.normal(k_x, (N, L, 2), dtype=jnp.float32)
    m = (jax.random.uniform(k_m, (N, L, 1)) > 0.5).astype(jnp.float32)
    params = init_params(k_p)

    out = jax.jit(inpaintnet_forward)(x, m, params)
    jax.block_until_ready(out)

    ref = inpaintnet_reference(x, m, params)
    assert out.shape == (N, L, 2), out.shape
    # bf16 MXU matmuls with f32 accumulation vs. a HIGHEST-precision f32 reference:
    # allow small rounding drift compounded over the 9 conv layers (post-sigmoid output).
    err = float(jnp.max(jnp.abs(out - ref)))
    assert err < 1e-2, err

    print("KERNEL_OK")
</pallas_src>

<mosaic_0001>
module attributes {stable_mosaic.version = 11 : i64} {
  func.func @kernel(%arg0: i32, %arg1: memref<16x3xf32, #tpu.memory_space<vmem>>, %arg2: memref<16x1xf32, #tpu.memory_space<vmem>>, %arg3: memref<16x1xf32, #tpu.memory_space<vmem>>, %arg4: memref<9x32xbf16, #tpu.memory_space<vmem>>, %arg5: memref<1x32xf32, #tpu.memory_space<vmem>>, %arg6: memref<96x64xbf16, #tpu.memory_space<vmem>>, %arg7: memref<1x64xf32, #tpu.memory_space<vmem>>, %arg8: memref<192x128xbf16, #tpu.memory_space<vmem>>, %arg9: memref<1x128xf32, #tpu.memory_space<vmem>>, %arg10: memref<3x128x256xbf16, #tpu.memory_space<vmem>>, %arg11: memref<1x256xf32, #tpu.memory_space<vmem>>, %arg12: memref<3x256x256xbf16, #tpu.memory_space<vmem>>, %arg13: memref<1x256xf32, #tpu.memory_space<vmem>>, %arg14: memref<3x256x128xbf16, #tpu.memory_space<vmem>>, %arg15: memref<3x128x128xbf16, #tpu.memory_space<vmem>>, %arg16: memref<1x128xf32, #tpu.memory_space<vmem>>, %arg17: memref<3x128x64xbf16, #tpu.memory_space<vmem>>, %arg18: memref<192x64xbf16, #tpu.memory_space<vmem>>, %arg19: memref<1x64xf32, #tpu.memory_space<vmem>>, %arg20: memref<192x32xbf16, #tpu.memory_space<vmem>>, %arg21: memref<96x32xbf16, #tpu.memory_space<vmem>>, %arg22: memref<1x32xf32, #tpu.memory_space<vmem>>, %arg23: memref<96x2xbf16, #tpu.memory_space<vmem>>, %arg24: memref<1x2xf32, #tpu.memory_space<vmem>>, %arg25: memref<16x2xf32, #tpu.memory_space<vmem>>) attributes {dimension_semantics = [#tpu.dimension_semantics<parallel>], iteration_bounds = array<i64: 2>, scalar_prefetch = 0 : i64, scratch_operands = 0 : i64, tpu.core_type = #tpu.core_type<tc>, window_params = [{transform_indices = @transform_0, window_bounds = array<i64: 16, 3>}, {pipeline_mode = #tpu.pipeline_mode<synchronous>, transform_indices = @transform_1, window_bounds = array<i64: 16, 1>}, {pipeline_mode = #tpu.pipeline_mode<synchronous>, transform_indices = @transform_2, window_bounds = array<i64: 16, 1>}, {pipeline_mode = #tpu.pipeline_mode<synchronous>, transform_indices = @transform_3, window_bounds = array<i64: 9, 32>}, {pipeline_mode = #tpu.pipeline_mode<synchronous>, transform_indices = @transform_4, window_bounds = array<i64: 1, 32>}, {pipeline_mode = #tpu.pipeline_mode<synchronous>, transform_indices = @transform_5, window_bounds = array<i64: 96, 64>}, {pipeline_mode = #tpu.pipeline_mode<synchronous>, transform_indices = @transform_6, window_bounds = array<i64: 1, 64>}, {pipeline_mode = #tpu.pipeline_mode<synchronous>, transform_indices = @transform_7, window_bounds = array<i64: 192, 128>}, {pipeline_mode = #tpu.pipeline_mode<synchronous>, transform_indices = @transform_8, window_bounds = array<i64: 1, 128>}, {pipeline_mode = #tpu.pipeline_mode<synchronous>, transform_indices = @transform_9, window_bounds = array<i64: 3, 128, 256>}, {pipeline_mode = #tpu.pipeline_mode<synchronous>, transform_indices = @transform_10, window_bounds = array<i64: 1, 256>}, {pipeline_mode = #tpu.pipeline_mode<synchronous>, transform_indices = @transform_11, window_bounds = array<i64: 3, 256, 256>}, {pipeline_mode = #tpu.pipeline_mode<synchronous>, transform_indices = @transform_12, window_bounds = array<i64: 1, 256>}, {pipeline_mode = #tpu.pipeline_mode<synchronous>, transform_indices = @transform_13, window_bounds = array<i64: 3, 256, 128>}, {pipeline_mode = #tpu.pipeline_mode<synchronous>, transform_indices = @transform_14, window_bounds = array<i64: 3, 128, 128>}, {pipeline_mode = #tpu.pipeline_mode<synchronous>, transform_indices = @transform_15, window_bounds = array<i64: 1, 128>}, {pipeline_mode = #tpu.pipeline_mode<synchronous>, transform_indices = @transform_16, window_bounds = array<i64: 3, 128, 64>}, {pipeline_mode = #tpu.pipeline_mode<synchronous>, transform_indices = @transform_17, window_bounds = array<i64: 192, 64>}, {pipeline_mode = #tpu.pipeline_mode<synchronous>, transform_indices = @transform_18, window_bounds = array<i64: 1, 64>}, {pipeline_mode = #tpu.pipeline_mode<synchronous>, transform_indices = @transform_19, window_bounds = array<i64: 192, 32>}, {pipeline_mode = #tpu.pipeline_mode<synchronous>, transform_indices = @transform_20, window_bounds = array<i64: 96, 32>}, {pipeline_mode = #tpu.pipeline_mode<synchronous>, transform_indices = @transform_21, window_bounds = array<i64: 1, 32>}, {pipeline_mode = #tpu.pipeline_mode<synchronous>, transform_indices = @transform_22, window_bounds = array<i64: 96, 2>}, {pipeline_mode = #tpu.pipeline_mode<synchronous>, transform_indices = @transform_23, window_bounds = array<i64: 1, 2>}, {transform_indices = @transform_24, window_bounds = array<i64: 16, 2>}]} {
    %c0 = arith.constant 0 : index
    %c0_0 = arith.constant 0 : index
    %0 = vector.load %arg2[%c0, %c0_0] : memref<16x1xf32, #tpu.memory_space<vmem>>, vector<16x1xf32>
    %c0_1 = arith.constant 0 : index
    %c0_2 = arith.constant 0 : index
    %1 = vector.load %arg3[%c0_1, %c0_2] : memref<16x1xf32, #tpu.memory_space<vmem>>, vector<16x1xf32>
    %c0_3 = arith.constant 0 : index
    %c0_4 = arith.constant 0 : index
    %2 = vector.load %arg1[%c0_3, %c0_4] : memref<16x3xf32, #tpu.memory_space<vmem>>, vector<16x3xf32>
    %c1_i32 = arith.constant 1 : i32
    %3 = tpu.dynamic_rotate %2 by %c1_i32 dim 0 : vector<16x3xf32>, i32 -> vector<16x3xf32>
    %c15_i32 = arith.constant 15 : i32
    %4 = tpu.dynamic_rotate %2 by %c15_i32 dim 0 : vector<16x3xf32>, i32 -> vector<16x3xf32>
    %5 = vector.broadcast %0 : vector<16x1xf32> to vector<16x3xf32>
    %6 = arith.mulf %3, %5 : vector<16x3xf32>
    %7 = vector.broadcast %1 : vector<16x1xf32> to vector<16x3xf32>
    %8 = arith.mulf %4, %7 : vector<16x3xf32>
    %9 = tpu.concatenate %6, %2, %8 in 1 : vector<16x3xf32>, vector<16x3xf32>, vector<16x3xf32> -> vector<16x9xf32>
    %10 = arith.truncf %9 : vector<16x9xf32> to vector<16x9xbf16>
    %c0_5 = arith.constant 0 : index
    %c0_6 = arith.constant 0 : index
    %11 = vector.load %arg4[%c0_5, %c0_6] : memref<9x32xbf16, #tpu.memory_space<vmem>>, vector<9x32xbf16>
    %cst = arith.constant dense<0.000000e+00> : vector<16x32xf32>
    %12 = tpu.matmul %10, %11, %cst {dimension_numbers = #tpu.dot_dimension_numbers<[1], [0], [0], [1], [0, 0, 1, 1], [], []>} : vector<16x9xbf16>, vector<9x32xbf16>, vector<16x32xf32> -> vector<16x32xf32>
    %c0_7 = arith.constant 0 : index
    %c0_8 = arith.constant 0 : index
    %13 = vector.load %arg5[%c0_7, %c0_8] : memref<1x32xf32, #tpu.memory_space<vmem>>, vector<1x32xf32>
    %14 = vector.broadcast %13 : vector<1x32xf32> to vector<16x32xf32>
    %15 = arith.addf %12, %14 : vector<16x32xf32>
    %cst_9 = arith.constant 0.00999999977 : f32
    %16 = vector.broadcast %cst_9 : f32 to vector<16x32xf32>
    %17 = arith.mulf %16, %15 : vector<16x32xf32>
    %18 = arith.maximumf %15, %17 : vector<16x32xf32>
    %c1_i32_10 = arith.constant 1 : i32
    %19 = tpu.dynamic_rotate %18 by %c1_i32_10 dim 0 : vector<16x32xf32>, i32 -> vector<16x32xf32>
    %c15_i32_11 = arith.constant 15 : i32
    %20 = tpu.dynamic_rotate %18 by %c15_i32_11 dim 0 : vector<16x32xf32>, i32 -> vector<16x32xf32>
    %21 = vector.broadcast %0 : vector<16x1xf32> to vector<16x32xf32>
    %22 = arith.mulf %19, %21 : vector<16x32xf32>
    %23 = vector.broadcast %1 : vector<16x1xf32> to vector<16x32xf32>
    %24 = arith.mulf %20, %23 : vector<16x32xf32>
    %25 = tpu.concatenate %22, %18, %24 in 1 : vector<16x32xf32>, vector<16x32xf32>, vector<16x32xf32> -> vector<16x96xf32>
    %26 = arith.truncf %25 : vector<16x96xf32> to vector<16x96xbf16>
    %c0_12 = arith.constant 0 : index
    %c0_13 = arith.constant 0 : index
    %27 = vector.load %arg6[%c0_12, %c0_13] : memref<96x64xbf16, #tpu.memory_space<vmem>>, vector<96x64xbf16>
    %cst_14 = arith.constant dense<0.000000e+00> : vector<16x64xf32>
    %28 = tpu.matmul %26, %27, %cst_14 {dimension_numbers = #tpu.dot_dimension_numbers<[1], [0], [0], [1], [0, 0, 1, 1], [], []>} : vector<16x96xbf16>, vector<96x64xbf16>, vector<16x64xf32> -> vector<16x64xf32>
    %c0_15 = arith.constant 0 : index
    %c0_16 = arith.constant 0 : index
    %29 = vector.load %arg7[%c0_15, %c0_16] : memref<1x64xf32, #tpu.memory_space<vmem>>, vector<1x64xf32>
    %30 = vector.broadcast %29 : vector<1x64xf32> to vector<16x64xf32>
    %31 = arith.addf %28, %30 : vector<16x64xf32>
    %cst_17 = arith.constant 0.00999999977 : f32
    %32 = vector.broadcast %cst_17 : f32 to vector<16x64xf32>
    %33 = arith.mulf %32, %31 : vector<16x64xf32>
    %34 = arith.maximumf %31, %33 : vector<16x64xf32>
    %c1_i32_18 = arith.constant 1 : i32
    %35 = tpu.dynamic_rotate %34 by %c1_i32_18 dim 0 : vector<16x64xf32>, i32 -> vector<16x64xf32>
    %c15_i32_19 = arith.constant 15 : i32
    %36 = tpu.dynamic_rotate %34 by %c15_i32_19 dim 0 : vector<16x64xf32>, i32 -> vector<16x64xf32>
    %37 = vector.broadcast %0 : vector<16x1xf32> to vector<16x64xf32>
    %38 = arith.mulf %35, %37 : vector<16x64xf32>
    %39 = vector.broadcast %1 : vector<16x1xf32> to vector<16x64xf32>
    %40 = arith.mulf %36, %39 : vector<16x64xf32>
    %41 = tpu.concatenate %38, %34, %40 in 1 : vector<16x64xf32>, vector<16x64xf32>, vector<16x64xf32> -> vector<16x192xf32>
    %42 = arith.truncf %41 : vector<16x192xf32> to vector<16x192xbf16>
    %c0_20 = arith.constant 0 : index
    %c0_21 = arith.constant 0 : index
    %43 = vector.load %arg8[%c0_20, %c0_21] : memref<192x128xbf16, #tpu.memory_space<vmem>>, vector<192x128xbf16>
    %cst_22 = arith.constant dense<0.000000e+00> : vector<16x128xf32>
    %44 = tpu.matmul %42, %43, %cst_22 {dimension_numbers = #tpu.dot_dimension_numbers<[1], [0], [0], [1], [0, 0, 1, 1], [], []>} : vector<16x192xbf16>, vector<192x128xbf16>, vector<16x128xf32> -> vector<16x128xf32>
    %c0_23 = arith.constant 0 : index
    %c0_24 = arith.constant 0 : index
    %45 = vector.load %arg9[%c0_23, %c0_24] : memref<1x128xf32, #tpu.memory_space<vmem>>, vector<1x128xf32>
    %46 = vector.broadcast %45 : vector<1x128xf32> to vector<16x128xf32>
    %47 = arith.addf %44, %46 : vector<16x128xf32>
    %cst_25 = arith.constant 0.00999999977 : f32
    %48 = vector.broadcast %cst_25 : f32 to vector<16x128xf32>
    %49 = arith.mulf %48, %47 : vector<16x128xf32>
    %50 = arith.maximumf %47, %49 : vector<16x128xf32>
    %c1_i32_26 = arith.constant 1 : i32
    %51 = tpu.dynamic_rotate %50 by %c1_i32_26 dim 0 : vector<16x128xf32>, i32 -> vector<16x128xf32>
    %c15_i32_27 = arith.constant 15 : i32
    %52 = tpu.dynamic_rotate %50 by %c15_i32_27 dim 0 : vector<16x128xf32>, i32 -> vector<16x128xf32>
    %53 = vector.broadcast %0 : vector<16x1xf32> to vector<16x128xf32>
    %54 = arith.mulf %53, %51 : vector<16x128xf32>
    %55 = arith.truncf %54 : vector<16x128xf32> to vector<16x128xbf16>
    %c0_28 = arith.constant 0 : index
    %c0_29 = arith.constant 0 : index
    %c0_30 = arith.constant 0 : index
    %56 = vector.load %arg10[%c0_28, %c0_29, %c0_30] : memref<3x128x256xbf16, #tpu.memory_space<vmem>>, vector<1x128x256xbf16>
    %57 = vector.shape_cast %56 : vector<1x128x256xbf16> to vector<128x256xbf16>
    %cst_31 = arith.constant dense<0.000000e+00> : vector<16x256xf32>
    %58 = tpu.matmul %55, %57, %cst_31 {dimension_numbers = #tpu.dot_dimension_numbers<[1], [0], [0], [1], [0, 0, 1, 1], [], []>} : vector<16x128xbf16>, vector<128x256xbf16>, vector<16x256xf32> -> vector<16x256xf32>
    %59 = arith.truncf %50 : vector<16x128xf32> to vector<16x128xbf16>
    %c1 = arith.constant 1 : index
    %c0_32 = arith.constant 0 : index
    %c0_33 = arith.constant 0 : index
    %60 = vector.load %arg10[%c1, %c0_32, %c0_33] : memref<3x128x256xbf16, #tpu.memory_space<vmem>>, vector<1x128x256xbf16>
    %61 = vector.shape_cast %60 : vector<1x128x256xbf16> to vector<128x256xbf16>
    %cst_34 = arith.constant dense<0.000000e+00> : vector<16x256xf32>
    %62 = tpu.matmul %59, %61, %cst_34 {dimension_numbers = #tpu.dot_dimension_numbers<[1], [0], [0], [1], [0, 0, 1, 1], [], []>} : vector<16x128xbf16>, vector<128x256xbf16>, vector<16x256xf32> -> vector<16x256xf32>
    %63 = vector.broadcast %1 : vector<16x1xf32> to vector<16x128xf32>
    %64 = arith.mulf %63, %52 : vector<16x128xf32>
    %65 = arith.truncf %64 : vector<16x128xf32> to vector<16x128xbf16>
    %c2 = arith.constant 2 : index
    %c0_35 = arith.constant 0 : index
    %c0_36 = arith.constant 0 : index
    %66 = vector.load %arg10[%c2, %c0_35, %c0_36] : memref<3x128x256xbf16, #tpu.memory_space<vmem>>, vector<1x128x256xbf16>
    %67 = vector.shape_cast %66 : vector<1x128x256xbf16> to vector<128x256xbf16>
    %cst_37 = arith.constant dense<0.000000e+00> : vector<16x256xf32>
    %68 = tpu.matmul %65, %67, %cst_37 {dimension_numbers = #tpu.dot_dimension_numbers<[1], [0], [0], [1], [0, 0, 1, 1], [], []>} : vector<16x128xbf16>, vector<128x256xbf16>, vector<16x256xf32> -> vector<16x256xf32>
    %69 = arith.addf %58, %62 : vector<16x256xf32>
    %70 = arith.addf %69, %68 : vector<16x256xf32>
    %c0_38 = arith.constant 0 : index
    %c0_39 = arith.constant 0 : index
    %71 = vector.load %arg11[%c0_38, %c0_39] : memref<1x256xf32, #tpu.memory_space<vmem>>, vector<1x256xf32>
    %72 = vector.broadcast %71 : vector<1x256xf32> to vector<16x256xf32>
    %73 = arith.addf %70, %72 : vector<16x256xf32>
    %cst_40 = arith.constant 0.00999999977 : f32
    %74 = vector.broadcast %cst_40 : f32 to vector<16x256xf32>
    %75 = arith.mulf %74, %73 : vector<16x256xf32>
    %76 = arith.maximumf %73, %75 : vector<16x256xf32>
    %c1_i32_41 = arith.constant 1 : i32
    %77 = tpu.dynamic_rotate %76 by %c1_i32_41 dim 0 : vector<16x256xf32>, i32 -> vector<16x256xf32>
    %c15_i32_42 = arith.constant 15 : i32
    %78 = tpu.dynamic_rotate %76 by %c15_i32_42 dim 0 : vector<16x256xf32>, i32 -> vector<16x256xf32>
    %79 = arith.truncf %77 : vector<16x256xf32> to vector<16x256xbf16>
    %c0_43 = arith.constant 0 : index
    %c0_44 = arith.constant 0 : index
    %c0_45 = arith.constant 0 : index
    %80 = vector.load %arg12[%c0_43, %c0_44, %c0_45] : memref<3x256x256xbf16, #tpu.memory_space<vmem>>, vector<1x256x256xbf16>
    %81 = vector.shape_cast %80 : vector<1x256x256xbf16> to vector<256x256xbf16>
    %cst_46 = arith.constant dense<0.000000e+00> : vector<16x256xf32>
    %82 = tpu.matmul %79, %81, %cst_46 {dimension_numbers = #tpu.dot_dimension_numbers<[1], [0], [0], [1], [0, 0, 1, 1], [], []>} : vector<16x256xbf16>, vector<256x256xbf16>, vector<16x256xf32> -> vector<16x256xf32>
    %83 = vector.broadcast %0 : vector<16x1xf32> to vector<16x256xf32>
    %84 = arith.mulf %83, %82 : vector<16x256xf32>
    %85 = arith.truncf %76 : vector<16x256xf32> to vector<16x256xbf16>
    %c1_47 = arith.constant 1 : index
    %c0_48 = arith.constant 0 : index
    %c0_49 = arith.constant 0 : index
    %86 = vector.load %arg12[%c1_47, %c0_48, %c0_49] : memref<3x256x256xbf16, #tpu.memory_space<vmem>>, vector<1x256x256xbf16>
    %87 = vector.shape_cast %86 : vector<1x256x256xbf16> to vector<256x256xbf16>
    %cst_50 = arith.constant dense<0.000000e+00> : vector<16x256xf32>
    %88 = tpu.matmul %85, %87, %cst_50 {dimension_numbers = #tpu.dot_dimension_numbers<[1], [0], [0], [1], [0, 0, 1, 1], [], []>} : vector<16x256xbf16>, vector<256x256xbf16>, vector<16x256xf32> -> vector<16x256xf32>
    %89 = arith.truncf %78 : vector<16x256xf32> to vector<16x256xbf16>
    %c2_51 = arith.constant 2 : index
    %c0_52 = arith.constant 0 : index
    %c0_53 = arith.constant 0 : index
    %90 = vector.load %arg12[%c2_51, %c0_52, %c0_53] : memref<3x256x256xbf16, #tpu.memory_space<vmem>>, vector<1x256x256xbf16>
    %91 = vector.shape_cast %90 : vector<1x256x256xbf16> to vector<256x256xbf16>
    %cst_54 = arith.constant dense<0.000000e+00> : vector<16x256xf32>
    %92 = tpu.matmul %89, %91, %cst_54 {dimension_numbers = #tpu.dot_dimension_numbers<[1], [0], [0], [1], [0, 0, 1, 1], [], []>} : vector<16x256xbf16>, vector<256x256xbf16>, vector<16x256xf32> -> vector<16x256xf32>
    %93 = vector.broadcast %1 : vector<16x1xf32> to vector<16x256xf32>
    %94 = arith.mulf %93, %92 : vector<16x256xf32>
    %95 = arith.addf %84, %88 : vector<16x256xf32>
    %96 = arith.addf %95, %94 : vector<16x256xf32>
    %c0_55 = arith.constant 0 : index
    %c0_56 = arith.constant 0 : index
    %97 = vector.load %arg13[%c0_55, %c0_56] : memref<1x256xf32, #tpu.memory_space<vmem>>, vector<1x256xf32>
    %98 = vector.broadcast %97 : vector<1x256xf32> to vector<16x256xf32>
    %99 = arith.addf %96, %98 : vector<16x256xf32>
    %cst_57 = arith.constant 0.00999999977 : f32
    %100 = vector.broadcast %cst_57 : f32 to vector<16x256xf32>
    %101 = arith.mulf %100, %99 : vector<16x256xf32>
    %102 = arith.maximumf %99, %101 : vector<16x256xf32>
    %c1_i32_58 = arith.constant 1 : i32
    %103 = tpu.dynamic_rotate %102 by %c1_i32_58 dim 0 : vector<16x256xf32>, i32 -> vector<16x256xf32>
    %c15_i32_59 = arith.constant 15 : i32
    %104 = tpu.dynamic_rotate %102 by %c15_i32_59 dim 0 : vector<16x256xf32>, i32 -> vector<16x256xf32>
    %105 = arith.truncf %103 : vector<16x256xf32> to vector<16x256xbf16>
    %c0_60 = arith.constant 0 : index
    %c0_61 = arith.constant 0 : index
    %c0_62 = arith.constant 0 : index
    %106 = vector.load %arg14[%c0_60, %c0_61, %c0_62] : memref<3x256x128xbf16, #tpu.memory_space<vmem>>, vector<1x256x128xbf16>
    %107 = vector.shape_cast %106 : vector<1x256x128xbf16> to vector<256x128xbf16>
    %cst_63 = arith.constant dense<0.000000e+00> : vector<16x128xf32>
    %108 = tpu.matmul %105, %107, %cst_63 {dimension_numbers = #tpu.dot_dimension_numbers<[1], [0], [0], [1], [0, 0, 1, 1], [], []>} : vector<16x256xbf16>, vector<256x128xbf16>, vector<16x128xf32> -> vector<16x128xf32>
    %109 = vector.broadcast %0 : vector<16x1xf32> to vector<16x128xf32>
    %110 = arith.mulf %109, %108 : vector<16x128xf32>
    %111 = arith.truncf %102 : vector<16x256xf32> to vector<16x256xbf16>
    %c1_64 = arith.constant 1 : index
    %c0_65 = arith.constant 0 : index
    %c0_66 = arith.constant 0 : index
    %112 = vector.load %arg14[%c1_64, %c0_65, %c0_66] : memref<3x256x128xbf16, #tpu.memory_space<vmem>>, vector<1x256x128xbf16>
    %113 = vector.shape_cast %112 : vector<1x256x128xbf16> to vector<256x128xbf16>
    %cst_67 = arith.constant dense<0.000000e+00> : vector<16x128xf32>
    %114 = tpu.matmul %111, %113, %cst_67 {dimension_numbers = #tpu.dot_dimension_numbers<[1], [0], [0], [1], [0, 0, 1, 1], [], []>} : vector<16x256xbf16>, vector<256x128xbf16>, vector<16x128xf32> -> vector<16x128xf32>
    %115 = arith.truncf %104 : vector<16x256xf32> to vector<16x256xbf16>
    %c2_68 = arith.constant 2 : index
    %c0_69 = arith.constant 0 : index
    %c0_70 = arith.constant 0 : index
    %116 = vector.load %arg14[%c2_68, %c0_69, %c0_70] : memref<3x256x128xbf16, #tpu.memory_space<vmem>>, vector<1x256x128xbf16>
    %117 = vector.shape_cast %116 : vector<1x256x128xbf16> to vector<256x128xbf16>
    %cst_71 = arith.constant dense<0.000000e+00> : vector<16x128xf32>
    %118 = tpu.matmul %115, %117, %cst_71 {dimension_numbers = #tpu.dot_dimension_numbers<[1], [0], [0], [1], [0, 0, 1, 1], [], []>} : vector<16x256xbf16>, vector<256x128xbf16>, vector<16x128xf32> -> vector<16x128xf32>
    %119 = vector.broadcast %1 : vector<16x1xf32> to vector<16x128xf32>
    %120 = arith.mulf %119, %118 : vector<16x128xf32>
    %c1_i32_72 = arith.constant 1 : i32
    %121 = tpu.dynamic_rotate %50 by %c1_i32_72 dim 0 : vector<16x128xf32>, i32 -> vector<16x128xf32>
    %c15_i32_73 = arith.constant 15 : i32
    %122 = tpu.dynamic_rotate %50 by %c15_i32_73 dim 0 : vector<16x128xf32>, i32 -> vector<16x128xf32>
    %123 = arith.truncf %121 : vector<16x128xf32> to vector<16x128xbf16>
    %c0_74 = arith.constant 0 : index
    %c0_75 = arith.constant 0 : index
    %c0_76 = arith.constant 0 : index
    %124 = vector.load %arg15[%c0_74, %c0_75, %c0_76] : memref<3x128x128xbf16, #tpu.memory_space<vmem>>, vector<1x128x128xbf16>
    %125 = vector.shape_cast %124 : vector<1x128x128xbf16> to vector<128x128xbf16>
    %cst_77 = arith.constant dense<0.000000e+00> : vector<16x128xf32>
    %126 = tpu.matmul %123, %125, %cst_77 {dimension_numbers = #tpu.dot_dimension_numbers<[1], [0], [0], [1], [0, 0, 1, 1], [], []>} : vector<16x128xbf16>, vector<128x128xbf16>, vector<16x128xf32> -> vector<16x128xf32>
    %127 = vector.broadcast %0 : vector<16x1xf32> to vector<16x128xf32>
    %128 = arith.mulf %127, %126 : vector<16x128xf32>
    %c1_78 = arith.constant 1 : index
    %c0_79 = arith.constant 0 : index
    %c0_80 = arith.constant 0 : index
    %129 = vector.load %arg15[%c1_78, %c0_79, %c0_80] : memref<3x128x128xbf16, #tpu.memory_space<vmem>>, vector<1x128x128xbf16>
    %130 = vector.shape_cast %129 : vector<1x128x128xbf16> to vector<128x128xbf16>
    %cst_81 = arith.constant dense<0.000000e+00> : vector<16x128xf32>
    %131 = tpu.matmul %59, %130, %cst_81 {dimension_numbers = #tpu.dot_dimension_numbers<[1], [0], [0], [1], [0, 0, 1, 1], [], []>} : vector<16x128xbf16>, vector<128x128xbf16>, vector<16x128xf32> -> vector<16x128xf32>
    %132 = arith.truncf %122 : vector<16x128xf32> to vector<16x128xbf16>
    %c2_82 = arith.constant 2 : index
    %c0_83 = arith.constant 0 : index
    %c0_84 = arith.constant 0 : index
    %133 = vector.load %arg15[%c2_82, %c0_83, %c0_84] : memref<3x128x128xbf16, #tpu.memory_space<vmem>>, vector<1x128x128xbf16>
    %134 = vector.shape_cast %133 : vector<1x128x128xbf16> to vector<128x128xbf16>
    %cst_85 = arith.constant dense<0.000000e+00> : vector<16x128xf32>
    %135 = tpu.matmul %132, %134, %cst_85 {dimension_numbers = #tpu.dot_dimension_numbers<[1], [0], [0], [1], [0, 0, 1, 1], [], []>} : vector<16x128xbf16>, vector<128x128xbf16>, vector<16x128xf32> -> vector<16x128xf32>
    %136 = vector.broadcast %1 : vector<16x1xf32> to vector<16x128xf32>
    %137 = arith.mulf %136, %135 : vector<16x128xf32>
    %138 = arith.addf %110, %114 : vector<16x128xf32>
    %139 = arith.addf %138, %120 : vector<16x128xf32>
    %140 = arith.addf %139, %128 : vector<16x128xf32>
    %141 = arith.addf %140, %131 : vector<16x128xf32>
    %142 = arith.addf %141, %137 : vector<16x128xf32>
    %c0_86 = arith.constant 0 : index
    %c0_87 = arith.constant 0 : index
    %143 = vector.load %arg16[%c0_86, %c0_87] : memref<1x128xf32, #tpu.memory_space<vmem>>, vector<1x128xf32>
    %144 = vector.broadcast %143 : vector<1x128xf32> to vector<16x128xf32>
    %145 = arith.addf %142, %144 : vector<16x128xf32>
    %cst_88 = arith.constant 0.00999999977 : f32
    %146 = vector.broadcast %cst_88 : f32 to vector<16x128xf32>
    %147 = arith.mulf %146, %145 : vector<16x128xf32>
    %148 = arith.maximumf %145, %147 : vector<16x128xf32>
    %c1_i32_89 = arith.constant 1 : i32
    %149 = tpu.dynamic_rotate %148 by %c1_i32_89 dim 0 : vector<16x128xf32>, i32 -> vector<16x128xf32>
    %c15_i32_90 = arith.constant 15 : i32
    %150 = tpu.dynamic_rotate %148 by %c15_i32_90 dim 0 : vector<16x128xf32>, i32 -> vector<16x128xf32>
    %151 = arith.truncf %149 : vector<16x128xf32> to vector<16x128xbf16>
    %c0_91 = arith.constant 0 : index
    %c0_92 = arith.constant 0 : index
    %c0_93 = arith.constant 0 : index
    %152 = vector.load %arg17[%c0_91, %c0_92, %c0_93] : memref<3x128x64xbf16, #tpu.memory_space<vmem>>, vector<1x128x64xbf16>
    %153 = vector.shape_cast %152 : vector<1x128x64xbf16> to vector<128x64xbf16>
    %cst_94 = arith.constant dense<0.000000e+00> : vector<16x64xf32>
    %154 = tpu.matmul %151, %153, %cst_94 {dimension_numbers = #tpu.dot_dimension_numbers<[1], [0], [0], [1], [0, 0, 1, 1], [], []>} : vector<16x128xbf16>, vector<128x64xbf16>, vector<16x64xf32> -> vector<16x64xf32>
    %155 = vector.broadcast %0 : vector<16x1xf32> to vector<16x64xf32>
    %156 = arith.mulf %155, %154 : vector<16x64xf32>
    %157 = arith.truncf %148 : vector<16x128xf32> to vector<16x128xbf16>
    %c1_95 = arith.constant 1 : index
    %c0_96 = arith.constant 0 : index
    %c0_97 = arith.constant 0 : index
    %158 = vector.load %arg17[%c1_95, %c0_96, %c0_97] : memref<3x128x64xbf16, #tpu.memory_space<vmem>>, vector<1x128x64xbf16>
    %159 = vector.shape_cast %158 : vector<1x128x64xbf16> to vector<128x64xbf16>
    %cst_98 = arith.constant dense<0.000000e+00> : vector<16x64xf32>
    %160 = tpu.matmul %157, %159, %cst_98 {dimension_numbers = #tpu.dot_dimension_numbers<[1], [0], [0], [1], [0, 0, 1, 1], [], []>} : vector<16x128xbf16>, vector<128x64xbf16>, vector<16x64xf32> -> vector<16x64xf32>
    %161 = arith.truncf %150 : vector<16x128xf32> to vector<16x128xbf16>
    %c2_99 = arith.constant 2 : index
    %c0_100 = arith.constant 0 : index
    %c0_101 = arith.constant 0 : index
    %162 = vector.load %arg17[%c2_99, %c0_100, %c0_101] : memref<3x128x64xbf16, #tpu.memory_space<vmem>>, vector<1x128x64xbf16>
    %163 = vector.shape_cast %162 : vector<1x128x64xbf16> to vector<128x64xbf16>
    %cst_102 = arith.constant dense<0.000000e+00> : vector<16x64xf32>
    %164 = tpu.matmul %161, %163, %cst_102 {dimension_numbers = #tpu.dot_dimension_numbers<[1], [0], [0], [1], [0, 0, 1, 1], [], []>} : vector<16x128xbf16>, vector<128x64xbf16>, vector<16x64xf32> -> vector<16x64xf32>
    %165 = vector.broadcast %1 : vector<16x1xf32> to vector<16x64xf32>
    %166 = arith.mulf %165, %164 : vector<16x64xf32>
    %c1_i32_103 = arith.constant 1 : i32
    %167 = tpu.dynamic_rotate %34 by %c1_i32_103 dim 0 : vector<16x64xf32>, i32 -> vector<16x64xf32>
    %c15_i32_104 = arith.constant 15 : i32
    %168 = tpu.dynamic_rotate %34 by %c15_i32_104 dim 0 : vector<16x64xf32>, i32 -> vector<16x64xf32>
    %169 = vector.broadcast %0 : vector<16x1xf32> to vector<16x64xf32>
    %170 = arith.mulf %167, %169 : vector<16x64xf32>
    %171 = vector.broadcast %1 : vector<16x1xf32> to vector<16x64xf32>
    %172 = arith.mulf %168, %171 : vector<16x64xf32>
    %173 = tpu.concatenate %170, %34, %172 in 1 : vector<16x64xf32>, vector<16x64xf32>, vector<16x64xf32> -> vector<16x192xf32>
    %174 = arith.truncf %173 : vector<16x192xf32> to vector<16x192xbf16>
    %c0_105 = arith.constant 0 : index
    %c0_106 = arith.constant 0 : index
    %175 = vector.load %arg18[%c0_105, %c0_106] : memref<192x64xbf16, #tpu.memory_space<vmem>>, vector<192x64xbf16>
    %cst_107 = arith.constant dense<0.000000e+00> : vector<16x64xf32>
    %176 = tpu.matmul %174, %175, %cst_107 {dimension_numbers = #tpu.dot_dimension_numbers<[1], [0], [0], [1], [0, 0, 1, 1], [], []>} : vector<16x192xbf16>, vector<192x64xbf16>, vector<16x64xf32> -> vector<16x64xf32>
    %177 = arith.addf %156, %160 : vector<16x64xf32>
    %178 = arith.addf %177, %166 : vector<16x64xf32>
    %179 = arith.addf %178, %176 : vector<16x64xf32>
    %c0_108 = arith.constant 0 : index
    %c0_109 = arith.constant 0 : index
    %180 = vector.load %arg19[%c0_108, %c0_109] : memref<1x64xf32, #tpu.memory_space<vmem>>, vector<1x64xf32>
    %181 = vector.broadcast %180 : vector<1x64xf32> to vector<16x64xf32>
    %182 = arith.addf %179, %181 : vector<16x64xf32>
    %cst_110 = arith.constant 0.00999999977 : f32
    %183 = vector.broadcast %cst_110 : f32 to vector<16x64xf32>
    %184 = arith.mulf %183, %182 : vector<16x64xf32>
    %185 = arith.maximumf %182, %184 : vector<16x64xf32>
    %c1_i32_111 = arith.constant 1 : i32
    %186 = tpu.dynamic_rotate %185 by %c1_i32_111 dim 0 : vector<16x64xf32>, i32 -> vector<16x64xf32>
    %c15_i32_112 = arith.constant 15 : i32
    %187 = tpu.dynamic_rotate %185 by %c15_i32_112 dim 0 : vector<16x64xf32>, i32 -> vector<16x64xf32>
    %188 = vector.broadcast %0 : vector<16x1xf32> to vector<16x64xf32>
    %189 = arith.mulf %186, %188 : vector<16x64xf32>
    %190 = vector.broadcast %1 : vector<16x1xf32> to vector<16x64xf32>
    %191 = arith.mulf %187, %190 : vector<16x64xf32>
    %192 = tpu.concatenate %189, %185, %191 in 1 : vector<16x64xf32>, vector<16x64xf32>, vector<16x64xf32> -> vector<16x192xf32>
    %193 = arith.truncf %192 : vector<16x192xf32> to vector<16x192xbf16>
    %c0_113 = arith.constant 0 : index
    %c0_114 = arith.constant 0 : index
    %194 = vector.load %arg20[%c0_113, %c0_114] : memref<192x32xbf16, #tpu.memory_space<vmem>>, vector<192x32xbf16>
    %cst_115 = arith.constant dense<0.000000e+00> : vector<16x32xf32>
    %195 = tpu.matmul %193, %194, %cst_115 {dimension_numbers = #tpu.dot_dimension_numbers<[1], [0], [0], [1], [0, 0, 1, 1], [], []>} : vector<16x192xbf16>, vector<192x32xbf16>, vector<16x32xf32> -> vector<16x32xf32>
    %c1_i32_116 = arith.constant 1 : i32
    %196 = tpu.dynamic_rotate %18 by %c1_i32_116 dim 0 : vector<16x32xf32>, i32 -> vector<16x32xf32>
    %c15_i32_117 = arith.constant 15 : i32
    %197 = tpu.dynamic_rotate %18 by %c15_i32_117 dim 0 : vector<16x32xf32>, i32 -> vector<16x32xf32>
    %198 = vector.broadcast %0 : vector<16x1xf32> to vector<16x32xf32>
    %199 = arith.mulf %196, %198 : vector<16x32xf32>
    %200 = vector.broadcast %1 : vector<16x1xf32> to vector<16x32xf32>
    %201 = arith.mulf %197, %200 : vector<16x32xf32>
    %202 = tpu.concatenate %199, %18, %201 in 1 : vector<16x32xf32>, vector<16x32xf32>, vector<16x32xf32> -> vector<16x96xf32>
    %203 = arith.truncf %202 : vector<16x96xf32> to vector<16x96xbf16>
    %c0_118 = arith.constant 0 : index
    %c0_119 = arith.constant 0 : index
    %204 = vector.load %arg21[%c0_118, %c0_119] : memref<96x32xbf16, #tpu.memory_space<vmem>>, vector<96x32xbf16>
    %cst_120 = arith.constant dense<0.000000e+00> : vector<16x32xf32>
    %205 = tpu.matmul %203, %204, %cst_120 {dimension_numbers = #tpu.dot_dimension_numbers<[1], [0], [0], [1], [0, 0, 1, 1], [], []>} : vector<16x96xbf16>, vector<96x32xbf16>, vector<16x32xf32> -> vector<16x32xf32>
    %206 = arith.addf %195, %205 : vector<16x32xf32>
    %c0_121 = arith.constant 0 : index
    %c0_122 = arith.constant 0 : index
    %207 = vector.load %arg22[%c0_121, %c0_122] : memref<1x32xf32, #tpu.memory_space<vmem>>, vector<1x32xf32>
    %208 = vector.broadcast %207 : vector<1x32xf32> to vector<16x32xf32>
    %209 = arith.addf %206, %208 : vector<16x32xf32>
    %cst_123 = arith.constant 0.00999999977 : f32
    %210 = vector.broadcast %cst_123 : f32 to vector<16x32xf32>
    %211 = arith.mulf %210, %209 : vector<16x32xf32>
    %212 = arith.maximumf %209, %211 : vector<16x32xf32>
    %c1_i32_124 = arith.constant 1 : i32
    %213 = tpu.dynamic_rotate %212 by %c1_i32_124 dim 0 : vector<16x32xf32>, i32 -> vector<16x32xf32>
    %c15_i32_125 = arith.constant 15 : i32
    %214 = tpu.dynamic_rotate %212 by %c15_i32_125 dim 0 : vector<16x32xf32>, i32 -> vector<16x32xf32>
    %215 = vector.broadcast %0 : vector<16x1xf32> to vector<16x32xf32>
    %216 = arith.mulf %213, %215 : vector<16x32xf32>
    %217 = vector.broadcast %1 : vector<16x1xf32> to vector<16x32xf32>
    %218 = arith.mulf %214, %217 : vector<16x32xf32>
    %219 = tpu.concatenate %216, %212, %218 in 1 : vector<16x32xf32>, vector<16x32xf32>, vector<16x32xf32> -> vector<16x96xf32>
    %220 = arith.truncf %219 : vector<16x96xf32> to vector<16x96xbf16>
    %c0_126 = arith.constant 0 : index
    %c0_127 = arith.constant 0 : index
    %221 = vector.load %arg23[%c0_126, %c0_127] : memref<96x2xbf16, #tpu.memory_space<vmem>>, vector<96x2xbf16>
    %cst_128 = arith.constant dense<0.000000e+00> : vector<16x2xf32>
    %222 = tpu.matmul %220, %221, %cst_128 {dimension_numbers = #tpu.dot_dimension_numbers<[1], [0], [0], [1], [0, 0, 1, 1], [], []>} : vector<16x96xbf16>, vector<96x2xbf16>, vector<16x2xf32> -> vector<16x2xf32>
    %c0_129 = arith.constant 0 : index
    %c0_130 = arith.constant 0 : index
    %223 = vector.load %arg24[%c0_129, %c0_130] : memref<1x2xf32, #tpu.memory_space<vmem>>, vector<1x2xf32>
    %224 = vector.broadcast %223 : vector<1x2xf32> to vector<16x2xf32>
    %225 = arith.addf %222, %224 : vector<16x2xf32>
    %cst_131 = arith.constant 0.000000e+00 : f32
    %226 = vector.broadcast %cst_131 : f32 to vector<16x2xf32>
    %227 = arith.subf %226, %225 : vector<16x2xf32>
    %228 = math.exp %227 : vector<16x2xf32>
    %cst_132 = arith.constant 1.000000e+00 : f32
    %229 = vector.broadcast %cst_132 : f32 to vector<16x2xf32>
    %230 = arith.addf %229, %228 : vector<16x2xf32>
    %cst_133 = arith.constant 1.000000e+00 : f32
    %231 = vector.broadcast %cst_133 : f32 to vector<16x2xf32>
    %232 = arith.divf %231, %230 : vector<16x2xf32>
    %c0_134 = arith.constant 0 : index
    %c0_135 = arith.constant 0 : index
    %233 = vector.load %arg25[%c0_134, %c0_135] : memref<16x2xf32, #tpu.memory_space<vmem>>, vector<16x2xf32>
    tpu.vector_store %arg25[%c0_134, %c0_135], %232 {strides = array<i32>} : memref<16x2xf32, #tpu.memory_space<vmem>>, vector<16x2xf32>,
    return
  }
  func.func @transform_0(%arg0: i32) -> (i32, i32) {
    %c0_i32 = arith.constant 0 : i32
    %c0_i32_0 = arith.constant 0 : i32
    return %arg0, %c0_i32 : i32, i32
  }
  func.func @transform_1(%arg0: i32) -> (i32, i32) {
    %c0_i32 = arith.constant 0 : i32
    %c0_i32_0 = arith.constant 0 : i32
    %c0_i32_1 = arith.constant 0 : i32
    return %c0_i32, %c0_i32_0 : i32, i32
  }
  func.func @transform_2(%arg0: i32) -> (i32, i32) {
    %c0_i32 = arith.constant 0 : i32
    %c0_i32_0 = arith.constant 0 : i32
    %c0_i32_1 = arith.constant 0 : i32
    return %c0_i32, %c0_i32_0 : i32, i32
  }
  func.func @transform_3(%arg0: i32) -> (i32, i32) {
    %c0_i32 = arith.constant 0 : i32
    %c0_i32_0 = arith.constant 0 : i32
    %c0_i32_1 = arith.constant 0 : i32
    return %c0_i32, %c0_i32_0 : i32, i32
  }
  func.func @transform_4(%arg0: i32) -> (i32, i32) {
    %c0_i32 = arith.constant 0 : i32
    %c0_i32_0 = arith.constant 0 : i32
    %c0_i32_1 = arith.constant 0 : i32
    return %c0_i32, %c0_i32_0 : i32, i32
  }
  func.func @transform_5(%arg0: i32) -> (i32, i32) {
    %c0_i32 = arith.constant 0 : i32
    %c0_i32_0 = arith.constant 0 : i32
    %c0_i32_1 = arith.constant 0 : i32
    return %c0_i32, %c0_i32_0 : i32, i32
  }
  func.func @transform_6(%arg0: i32) -> (i32, i32) {
    %c0_i32 = arith.constant 0 : i32
    %c0_i32_0 = arith.constant 0 : i32
    %c0_i32_1 = arith.constant 0 : i32
    return %c0_i32, %c0_i32_0 : i32, i32
  }
  func.func @transform_7(%arg0: i32) -> (i32, i32) {
    %c0_i32 = arith.constant 0 : i32
    %c0_i32_0 = arith.constant 0 : i32
    %c0_i32_1 = arith.constant 0 : i32
    return %c0_i32, %c0_i32_0 : i32, i32
  }
  func.func @transform_8(%arg0: i32) -> (i32, i32) {
    %c0_i32 = arith.constant 0 : i32
    %c0_i32_0 = arith.constant 0 : i32
    %c0_i32_1 = arith.constant 0 : i32
    return %c0_i32, %c0_i32_0 : i32, i32
  }
  func.func @transform_9(%arg0: i32) -> (i32, i32, i32) {
    %c0_i32 = arith.constant 0 : i32
    %c0_i32_0 = arith.constant 0 : i32
    %c0_i32_1 = arith.constant 0 : i32
    %c0_i32_2 = arith.constant 0 : i32
    return %c0_i32, %c0_i32_0, %c0_i32_1 : i32, i32, i32
  }
  func.func @transform_10(%arg0: i32) -> (i32, i32) {
    %c0_i32 = arith.constant 0 : i32
    %c0_i32_0 = arith.constant 0 : i32
    %c0_i32_1 = arith.constant 0 : i32
    return %c0_i32, %c0_i32_0 : i32, i32
  }
  func.func @transform_11(%arg0: i32) -> (i32, i32, i32) {
    %c0_i32 = arith.constant 0 : i32
    %c0_i32_0 = arith.constant 0 : i32
    %c0_i32_1 = arith.constant 0 : i32
    %c0_i32_2 = arith.constant 0 : i32
    return %c0_i32, %c0_i32_0, %c0_i32_1 : i32, i32, i32
  }
  func.func @transform_12(%arg0: i32) -> (i32, i32) {
    %c0_i32 = arith.constant 0 : i32
    %c0_i32_0 = arith.constant 0 : i32
    %c0_i32_1 = arith.constant 0 : i32
    return %c0_i32, %c0_i32_0 : i32, i32
  }
  func.func @transform_13(%arg0: i32) -> (i32, i32, i32) {
    %c0_i32 = arith.constant 0 : i32
    %c0_i32_0 = arith.constant 0 : i32
    %c0_i32_1 = arith.constant 0 : i32
    %c0_i32_2 = arith.constant 0 : i32
    return %c0_i32, %c0_i32_0, %c0_i32_1 : i32, i32, i32
  }
  func.func @transform_14(%arg0: i32) -> (i32, i32, i32) {
    %c0_i32 = arith.constant 0 : i32
    %c0_i32_0 = arith.constant 0 : i32
    %c0_i32_1 = arith.constant 0 : i32
    %c0_i32_2 = arith.constant 0 : i32
    return %c0_i32, %c0_i32_0, %c0_i32_1 : i32, i32, i32
  }
  func.func @transform_15(%arg0: i32) -> (i32, i32) {
    %c0_i32 = arith.constant 0 : i32
    %c0_i32_0 = arith.constant 0 : i32
    %c0_i32_1 = arith.constant 0 : i32
    return %c0_i32, %c0_i32_0 : i32, i32
  }
  func.func @transform_16(%arg0: i32) -> (i32, i32, i32) {
    %c0_i32 = arith.constant 0 : i32
    %c0_i32_0 = arith.constant 0 : i32
    %c0_i32_1 = arith.constant 0 : i32
    %c0_i32_2 = arith.constant 0 : i32
    return %c0_i32, %c0_i32_0, %c0_i32_1 : i32, i32, i32
  }
  func.func @transform_17(%arg0: i32) -> (i32, i32) {
    %c0_i32 = arith.constant 0 : i32
    %c0_i32_0 = arith.constant 0 : i32
    %c0_i32_1 = arith.constant 0 : i32
    return %c0_i32, %c0_i32_0 : i32, i32
  }
  func.func @transform_18(%arg0: i32) -> (i32, i32) {
    %c0_i32 = arith.constant 0 : i32
    %c0_i32_0 = arith.constant 0 : i32
    %c0_i32_1 = arith.constant 0 : i32
    return %c0_i32, %c0_i32_0 : i32, i32
  }
  func.func @transform_19(%arg0: i32) -> (i32, i32) {
    %c0_i32 = arith.constant 0 : i32
    %c0_i32_0 = arith.constant 0 : i32
    %c0_i32_1 = arith.constant 0 : i32
    return %c0_i32, %c0_i32_0 : i32, i32
  }
  func.func @transform_20(%arg0: i32) -> (i32, i32) {
    %c0_i32 = arith.constant 0 : i32
    %c0_i32_0 = arith.constant 0 : i32
    %c0_i32_1 = arith.constant 0 : i32
    return %c0_i32, %c0_i32_0 : i32, i32
  }
  func.func @transform_21(%arg0: i32) -> (i32, i32) {
    %c0_i32 = arith.constant 0 : i32
    %c0_i32_0 = arith.constant 0 : i32
    %c0_i32_1 = arith.constant 0 : i32
    return %c0_i32, %c0_i32_0 : i32, i32
  }
  func.func @transform_22(%arg0: i32) -> (i32, i32) {
    %c0_i32 = arith.constant 0 : i32
    %c0_i32_0 = arith.constant 0 : i32
    %c0_i32_1 = arith.constant 0 : i32
    return %c0_i32, %c0_i32_0 : i32, i32
  }
  func.func @transform_23(%arg0: i32) -> (i32, i32) {
    %c0_i32 = arith.constant 0 : i32
    %c0_i32_0 = arith.constant 0 : i32
    %c0_i32_1 = arith.constant 0 : i32
    return %c0_i32, %c0_i32_0 : i32, i32
  }
  func.func @transform_24(%arg0: i32) -> (i32, i32) {
    %c0_i32 = arith.constant 0 : i32
    %c0_i32_0 = arith.constant 0 : i32
    return %arg0, %c0_i32 : i32, i32
  }
}

</mosaic_0001>

<bundles_post_ra>
// kernel: inpaintnet_forward.1
= control target key start
LH: loop header
LB: loop body
LE: loop exit
PB: predicated region body
PF: predicated region fallthrough
CT: control target
= control target key end

     0   :  { %s7023_s0 = inlined_call_operand.vmem [shape: f32[32,3], index: 0, kind: input, shape index: {}]   ;;  %s7024_s1 = inlined_call_operand.vmem [shape: f32[16,1], index: 1, kind: input, shape index: {}]   ;;  %s7025_s2 = inlined_call_operand.vmem [shape: f32[16,1], index: 2, kind: input, shape index: {}]   ;;  %s7026_s3 = inlined_call_operand.vmem [shape: bf16[9,32], index: 3, kind: input, shape index: {}]   ;;  %s7027_s4 = inlined_call_operand.vmem [shape: f32[1,32], index: 4, kind: input, shape index: {}]   ;;  %s7028_s5 = inlined_call_operand.vmem [shape: bf16[96,64], index: 5, kind: input, shape index: {}]   ;;  %s7029_s6 = inlined_call_operand.vmem [shape: f32[1,64], index: 6, kind: input, shape index: {}]   ;;  %s7030_s7 = inlined_call_operand.vmem [shape: bf16[192,128], index: 7, kind: input, shape index: {}]   ;;  %s7031_s8 = inlined_call_operand.vmem [shape: f32[1,128], index: 8, kind: input, shape index: {}]   ;;  %s7032_s9 = inlined_call_operand.vmem [shape: bf16[3,128,256], index: 9, kind: input, shape index: {}]   ;;  %s7033_s10 = inlined_call_operand.vmem [shape: f32[1,256], index: 10, kind: input, shape index: {}]   ;;  %s7034_s11 = inlined_call_operand.vmem [shape: bf16[3,256,256], index: 11, kind: input, shape index: {}]   ;;  %s7035_s12 = inlined_call_operand.vmem [shape: f32[1,256], index: 12, kind: input, shape index: {}]   ;;  %s7036_s13 = inlined_call_operand.vmem [shape: bf16[3,256,128], index: 13, kind: input, shape index: {}]   ;;  %s7037_s14 = inlined_call_operand.vmem [shape: bf16[3,128,128], index: 14, kind: input, shape index: {}]   ;;  %s7038_s15 = inlined_call_operand.vmem [shape: f32[1,128], index: 15, kind: input, shape index: {}]   ;;  %s7039_s16 = inlined_call_operand.vmem [shape: bf16[3,128,64], index: 16, kind: input, shape index: {}]   ;;  %s7040_s17 = inlined_call_operand.vmem [shape: bf16[192,64], index: 17, kind: input, shape index: {}]   ;;  %s7041_s18 = inlined_call_operand.vmem [shape: f32[1,64], index: 18, kind: input, shape index: {}]   ;;  %s7042_s19 = inlined_call_operand.vmem [shape: bf16[192,32], index: 19, kind: input, shape index: {}]   ;;  %s7043_s20 = inlined_call_operand.vmem [shape: bf16[96,32], index: 20, kind: input, shape index: {}]   ;;  %s7044_s21 = inlined_call_operand.vmem [shape: f32[1,32], index: 21, kind: input, shape index: {}]   ;;  %s7045_s22 = inlined_call_operand.vmem [shape: bf16[96,2], index: 22, kind: input, shape index: {}]   ;;  %s7046_s23 = inlined_call_operand.vmem [shape: f32[1,2], index: 23, kind: input, shape index: {}]   ;;  %s7047_s24 = inlined_call_operand.vmem [shape: f32[32,2], index: 24, kind: output, shape index: {}]  }
   0x1   :  { %7058 = sst [smem:[#allocation2_spill]] %s7023_s0 }
   0x2   :  { %7059 = sst [smem:[#allocation3_spill]] %s7024_s1 }
   0x3   :  { %7060 = sst [smem:[#allocation4_spill]] %s7025_s2 }
   0x4   :  { %7061 = sst [smem:[#allocation5_spill]] %s7026_s3 }
   0x5   :  { %7062 = sst [smem:[#allocation6_spill]] %s7027_s4 }
   0x6   :  { %7063 = sst [smem:[#allocation7_spill]] %s7028_s5  ;;  %s5703_s5 = smov 0  }
   0x7   :  { %7064 = sst [smem:[#allocation8_spill]] %s7029_s6 }
   0x8   :  { %7065 = sst [smem:[#allocation9_spill]] %s7030_s7 }
   0x9   :  { %7066 = sst [smem:[#allocation10_spill]] %s7031_s8 }
   0xa LB: > { %s4260_s26 = sadd.s32 4294967295, %s5568_s5   ;;  %p4264_p0 = scmp.ge.s32.totalorder %s5568_s5, 1  ;;  %s5568_s5 = sphi %s5703_s5, %s34_s5  }
   0xb   : > { %p663_p1 = scmp.lt.s32.totalorder %s5568_s5, 3 }
   0xd   : > { %p664_p2 = pnand %p4264_p0, %p663_p1 }
   0xe   : > { %s7067_s6 = sld [smem:[#allocation4_spill]] (!%p664_p2)  ;;  %s7068_s0 = sld [smem:[#allocation3_spill]] (!%p664_p2)  ;;  %v750_v2 = vlaneseq (!%p664_p2)  ;;  %v5570_v3 = vmov (!%p664_p2), 0   ;;  %vm825_vm2 = vcmask (!%p664_p2), 1043456   ;;  %vm826_vm3 = vcmask (!%p664_p2), 1044480  }
   0xf   : > { %667 = sbr.rel (%p664_p2) target bundleno = 3050 (0xbea), region = 116  ;;  %s4265_s7 = sshll.u32 (!%p664_p2), %s4260_s26, 1  ;;  %5145 = vset.pattern.permute.xlu0 (!%p664_p2), %v5570_v3  ;;  %5146 = vset.pattern.permute.xlu1 (!%p664_p2), %v5570_v3  ;;  %v5572_v19 = vmov (!%p664_p2), 65535   ;;  %v5573_v23 = vmov (!%p664_p2), 0.0   ;;  %vm5574_vm4 = vmmov (!%p664_p2), 0   ;;  %vm800_vm5 = vcmask (!%p664_p2), 23552  }
  0x10   : > { %p730_p3 = scmp.lt.s32.totalorder (!%p664_p2), %s4265_s7, 3  ;;  %v5725_v6 = vshrl.u32 (!%p664_p2), %v750_v2, 7  ;;  %s7069_s27 = sld [smem:[#allocation2_spill]] (!%p664_p2)  ;;  %v827_v20 = vsel (!%p664_p2), %vm825_vm2, 4294967295, %v5572_v19  ;;  %4947 = vmatprep.subr.bf16.mxu0 (!%p664_p2), %v5573_v23  ;;  %4953 = vmatprep.subr.bf16.mxu1 (!%p664_p2), %v5573_v23  ;;  %vm803_vm6 = vcmask (!%p664_p2), 48128   ;;  %vm821_vm7 = vcmask (!%p664_p2), 72704  }
  0x11   : > { %s5571_s2 = smov (!%p664_p2), 3   ;;  %s7070_s3 = sld [smem:[#allocation5_spill]] (!%p664_p2)  ;;  %v828_v21 = vsel (!%p664_p2), %vm826_vm3, %v827_v20, 0  ;;  %4949 = vmatprep.mubr.msk.bf16.mxu0 (!%p664_p2), %vm5574_vm4, %v5573_v23  ;;  %4965 = vmatprep.mubr.msk.bf16.mxu1 (!%p664_p2), %vm5574_vm4, %v5573_v23  ;;  %vm905_vm8 = vcmask (!%p664_p2), 261120   ;;  %vm908_vm9 = vcmask (!%p664_p2), 523264   ;;  %vm967_vm10 = vcmask (!%p664_p2), 785408  }
  0x12   : > { %vm757_vm0 = vcmp.lt.s32.totalorder (!%p664_p2), %v5725_v6, 7  ;;  %vm752_vm1 = vcmp.lt.s32.totalorder (!%p664_p2), %v5725_v6, 1  ;;  %s5575_s25 = smov (!%p664_p2), 6   ;;  %s7071_s26 = sld [smem:[#allocation7_spill]] (!%p664_p2)  ;;  %vm4201_vm11 = vcmask (!%p664_p2), 15360  }
  0x13   : > { %s7072_s1 = sld [smem:[#allocation6_spill]] (!%p664_p2)  ;;  %s7053_s30 = smov (!%p664_p2), 32  }
  0x14   : > { %v744_v0 = vld [vmem:[%s7067_s6] sm:$0xff] (!%p664_p2)  ;;  %v745_v4 = vld [vmem:[%s7067_s6 + $0x8] sm:$0xff] (!%p664_p2)  ;;  %s7076_s8 = sld [smem:[#allocation10_spill]] (!%p664_p2) }
  0x15   : > { %v742_v1 = vld [vmem:[%s7068_s0] sm:$0xff] (!%p664_p2)  ;;  %v743_v5 = vld [vmem:[%s7068_s0 + $0x8] sm:$0xff] (!%p664_p2)  ;;  %774 = vperm.xlu0 (!%p664_p2), %5145, %v744_v0   ;;  %s7077_s0 = smov (!%p664_p2), 32  }
  0x16   : > { %762 = vperm.xlu1 %5146, %v742_v1   ;;  %s7080_s7 = smov (!%p730_p3, %s4265_s7), 3 }
  0x17   : > { %s7052_s4 = sshll.u32 %s7080_s7, 3  ;;  %v5187_v18 = vld [vmem:[%s7070_s3] sm:$0x1f]   ;;  %s7054_s3 = smov 64  }
  0x18   : > { %s733_s28 = scalar_lea.vmem %s7069_s27, %s7052_s4  ;;  %v830_v22 = vand.u32 %v5187_v18, %v828_v21  ;;  %v5188_v44 = vld [vmem:[%s7071_s26] sm:$0xff]   ;;  %v5189_v45 = vld [vmem:[%s7071_s26 + $0x8] sm:$0xff]   ;;  %v5190_v46 = vld [vmem:[%s7071_s26 + $0x10] sm:$0xff]  }
  0x19   : > { %779 = vperm.xlu0 %5145, %v745_v4   ;;  %v746_v7 = vld [vmem:[%s733_s28] sm:$0xff]  ;;  %v747_v8 = vld [vmem:[%s733_s28 + $0x8] sm:$0xff]  ;;  %4954 = vmatpush3.bf16.msra.mxu1 %v5188_v44  ;;  %v5191_v47 = vld [vmem:[%s7071_s26 + $0x18] sm:$0xff]   ;;  %s7075_s28 = smov 64  }
  0x1a   : > { %767 = vperm.xlu1 %5146, %v743_v5   ;;  %v749_v9 = vrot.slane %v747_v8, 7  ;;  %v756_v10 = vrot.slane %v747_v8, 1  ;;  %v5147_v11 = vpack.i.bf16 %v747_v8, %v746_v7  ;;  %v748_v12 = vrot.slane %v746_v7, 7  ;;  %4948 = vmatpush3.bf16.msra.mxu0 %v830_v22  ;;  %v4269_v48 = vld [vmem:[%s7072_s1] ss:$0 sm:$0xff]  ;;  %v5193_v57 = vld [vmem:[%s7071_s26 + $0x28] sm:$0xff]  }
  0x1b   : > { %v755_v13 = vrot.slane %v746_v7, 1  ;;  %1146 = vmatprep.subr.bf16.mxu0 %v5570_v3  ;;  %4955 = vmatprep.subr.bf16.mxu1 %v5573_v23  ;;  %v5192_v49 = vld [vmem:[%s7071_s26 + $0x20] sm:$0xff]   ;;  %s7073_s1 = sld [smem:[#allocation9_spill]] }
  0x1c   : > { %v753_v16 = vsel %vm752_vm1, %v748_v12, %v749_v9  ;;  %v754_v17 = vsel %vm752_vm1, %v749_v9, %v748_v12 }
  0x1d   : > { %5148 = vrot.lane.b32.xlu0 %v5147_v11, %s5571_s2  ;;  %v758_v14 = vsel %vm757_vm0, %v755_v13, %v756_v10  ;;  %v759_v15 = vsel %vm757_vm0, %v756_v10, %v755_v13  ;;  %4956 = vmatpush3.bf16.msra.mxu1 %v5189_v45 }
  0x1e   : > { %4957 = vmatprep.subr.bf16.mxu1 %v5573_v23 }
  0x21   : > { %4958 = vmatpush3.bf16.msra.mxu1 %v5190_v46 }
  0x22   : > { %4959 = vmatprep.subr.bf16.mxu1 %v5573_v23 }
  0x25   : > { %4960 = vmatpush3.bf16.msra.mxu1 %v5191_v47 }
  0x26   : > { %4961 = vmatprep.subr.bf16.mxu1 %v5573_v23 }
  0x29   : > { %4962 = vmatpush3.bf16.msra.mxu1 %v5192_v49  ;;  %v5206_v49 = vld [vmem:[%s7032_s9 + $0x80] ss:$8 sps:$4 sm:$0xff]  }
  0x2a   : > { %4963 = vmatprep.subr.bf16.mxu1 %v5573_v23 }
  0x2d   : > { %4964 = vmatpush3.bf16.msra.mxu1 %v5193_v57 }
  0x94   : > { %v5751_v24 = vpop.permute.xlu0 %774 }
  0x95   : > { %v782_v26 = vmul.f32 %v5751_v24, %v758_v14  ;;  %v5761_v29 = vpop.permute.xlu1 %762 }
  0x96   : > { %v770_v34 = vmul.f32 %v5761_v29, %v754_v17 }
  0x98   : > { %v5757_v25 = vpop.permute.xlu0 %779 }
  0x99   : > { %v783_v27 = vmul.f32 %v5757_v25, %v759_v15  ;;  %v5763_v30 = vpop.permute.xlu1 %767 }
  0x9a   : > { %v771_v35 = vmul.f32 %v5763_v30, %v753_v16 }
  0x9b   : > { %v5152_v28 = vpack.i.bf16 %v783_v27, %v782_v26  ;;  %v5194_v27 = vld [vmem:[%s7073_s1] sm:$0xff]  }
  0x9c   : > { %v5149_v31 = vpop.permute.xlu0 %5148 }
  0x9d   : > { %5153 = vrot.lane.b32.xlu1 %v5152_v28, %s5575_s25  ;;  %v5151_v32 = vunpack.i.h.bf16 %v5149_v31  ;;  %v5150_v33 = vunpack.i.l.bf16 %v5149_v31  ;;  %v5195_v28 = vld [vmem:[%s7073_s1 + $0x8] sm:$0xff]   ;;  %v5196_v31 = vld [vmem:[%s7073_s1 + $0x10] sm:$0xff]   ;;  %s7074_s25 = sld [smem:[#allocation8_spill]] }
  0x9f   : > { %v801_v39 = vsel %vm800_vm5, %v770_v34, %v5150_v33  ;;  %v802_v40 = vsel %vm800_vm5, %v771_v35, %v5151_v32  ;;  %v5197_v32 = vld [vmem:[%s7073_s1 + $0x18] sm:$0xff]   ;;  %v5198_v33 = vld [vmem:[%s7073_s1 + $0x20] sm:$0xff]   ;;  %v5199_v34 = vld [vmem:[%s7073_s1 + $0x28] sm:$0xff]  }
  0xa0   : > { %v5200_v35 = vld [vmem:[%s7073_s1 + $0x30] sm:$0xff]  }
 0x10f   : > { %v5154_v36 = vpop.permute.xlu1 %5153 }
 0x110   : > { %v5156_v37 = vunpack.i.h.bf16 %v5154_v36  ;;  %v5155_v38 = vunpack.i.l.bf16 %v5154_v36  ;;  %v5201_v36 = vld [vmem:[%s7073_s1 + $0x38] sm:$0xff]  }
 0x112   : > { %v804_v41 = vsel %vm803_vm6, %v801_v39, %v5155_v38  ;;  %v805_v42 = vsel %vm803_vm6, %v802_v40, %v5156_v37  ;;  %v5202_v37 = vld [vmem:[%s7073_s1 + $0x40] sm:$0xff]   ;;  %v5203_v38 = vld [vmem:[%s7073_s1 + $0x48] sm:$0xff]   ;;  %v5204_v39 = vld [vmem:[%s7073_s1 + $0x50] sm:$0xff]  }
 0x113   : > { %v806_v43 = vpack.c.bf16 %v805_v42, %v804_v41  ;;  %v4272_v40 = vld [vmem:[%s7074_s25] ss:$0 sm:$0xff]  ;;  %v5205_v41 = vld [vmem:[%s7073_s1 + $0x58] sm:$0xff]   ;;  %s7078_s25 = sshll.u32 %s7080_s7, 3 }
 0x114   : > { %s739_s2 = scalar_lea.vmem %s7047_s24, %s7078_s25 }
 0x115   : > { %4950 = vmatmul.mubr.msk.bf16.vlgmr.msra.gmra.mrb[0].mxu0 %vm821_vm7, %v806_v43 }
 0x116   : > { %1147 = vmatpush1.bf16.msra.mxu0 %v5194_v27  ;;  %v5224_v27 = vld [vmem:[%s7032_s9 + $0xe0] ss:$8 sps:$4 sm:$0xff]  }
 0x117   : > { %1148 = vmatprep.subr.bf16.mxu0 %v5570_v3 }
 0x11a   : > { %1149 = vmatpush1.bf16.msra.mxu0 %v5195_v28  ;;  %v5229_v28 = vld [vmem:[%s7032_s9 + $0xf4] ss:$8 sps:$4 sm:$0xff]  }
 0x11b   : > { %1150 = vmatprep.subr.bf16.mxu0 %v5570_v3 }
 0x11e   : > { %1151 = vmatpush1.bf16.msra.mxu0 %v5196_v31  ;;  %v5227_v31 = vld [vmem:[%s7032_s9 + $0xf0] ss:$8 sps:$4 sm:$0xff]  }
 0x11f   : > { %1152 = vmatprep.subr.bf16.mxu0 %v5570_v3 }
 0x122   : > { %1153 = vmatpush1.bf16.msra.mxu0 %v5197_v32  ;;  %v5232_v32 = vld [vmem:[%s7032_s9 + $0x104] ss:$8 sps:$4 sm:$0xff]  }
 0x123   : > { %1154 = vmatprep.subr.bf16.mxu0 %v5570_v3 }
 0x126   : > { %1155 = vmatpush1.bf16.msra.mxu0 %v5198_v33  ;;  %v5278_v33 = vld [vmem:[%s7034_s11] ss:$8 sps:$4 sm:$0xff]  }
 0x127   : > { %1156 = vmatprep.subr.bf16.mxu0 %v5570_v3 }
 0x12a   : > { %1157 = vmatpush1.bf16.msra.mxu0 %v5199_v34  ;;  %v5280_v34 = vld [vmem:[%s7034_s11 + $0x4] ss:$8 sps:$4 sm:$0xff]  }
 0x12b   : > { %1158 = vmatprep.subr.bf16.mxu0 %v5570_v3 }
 0x12e   : > { %1159 = vmatpush1.bf16.msra.mxu0 %v5200_v35  ;;  %v5286_v35 = vld [vmem:[%s7034_s11 + $0x14] ss:$8 sps:$4 sm:$0xff]  }
 0x12f   : > { %1160 = vmatprep.subr.bf16.mxu0 %v5570_v3 }
 0x132   : > { %1161 = vmatpush1.bf16.msra.mxu0 %v5201_v36  ;;  %v5284_v36 = vld [vmem:[%s7034_s11 + $0x10] ss:$8 sps:$4 sm:$0xff]  }
 0x133   : > { %1162 = vmatprep.subr.bf16.mxu0 %v5570_v3 }
 0x136   : > { %1163 = vmatpush1.bf16.msra.mxu0 %v5202_v37  ;;  %v5292_v37 = vld [vmem:[%s7034_s11 + $0x24] ss:$8 sps:$4 sm:$0xff]  }
 0x137   : > { %1164 = vmatprep.subr.bf16.mxu0 %v5570_v3 }
 0x13a   : > { %1165 = vmatpush1.bf16.msra.mxu0 %v5203_v38  ;;  %v5290_v38 = vld [vmem:[%s7034_s11 + $0x20] ss:$8 sps:$4 sm:$0xff]  }
 0x13b   : > { %1166 = vmatprep.subr.bf16.mxu0 %v5570_v3 }
 0x13e   : > { %1167 = vmatpush1.bf16.msra.mxu0 %v5204_v39  ;;  %v5298_v39 = vld [vmem:[%s7034_s11 + $0x34] ss:$8 sps:$4 sm:$0xff]  }
 0x13f   : > { %1168 = vmatprep.subr.bf16.mxu0 %v5570_v3 }
 0x142   : > { %1169 = vmatpush1.bf16.msra.mxu0 %v5205_v41  ;;  %v5304_v41 = vld [vmem:[%s7034_s11 + $0x44] ss:$8 sps:$4 sm:$0xff]  }
 0x143   : > { %1863 = vmatprep.subr.bf16.mxu0 %v5280_v34 }
 0x1e8   : > { %v866_v50 = vpop.f32.mrb[0].mxu0 }
 0x1e9   : > { %v867_v51 = vadd.f32 %v4269_v48, %v866_v50  ;;  %v4951_v52 = vpop.f32.mrb[1].mxu0  ;;  %v5208_v50 = vld [vmem:[%s7032_s9 + $0x84] ss:$8 sps:$4 sm:$0xff]  }
 0x1ea   : > { %v869_v53 = vpop.f32.mrb[2].mxu0  ;;  %1316 = vmatprep.subr.bf16.mxu1 %v5208_v50  ;;  %v5326_v50 = vld [vmem:[%s7034_s11 + $0x80] ss:$8 sps:$4 sm:$0xff]  }
 0x1eb   : > { %v873_v54 = vmul.f32 0.01, %v867_v51  ;;  %v870_v55 = vadd.f32 %v4269_v48, %v869_v53  ;;  %v4952_v56 = vpop.f32.mrb[3].mxu0 }
 0x1ec   : > { %v5209_v56 = vld [vmem:[%s7032_s9 + $0x90] ss:$8 sps:$4 sm:$0xff]  }
 0x1ed   : > { %v875_v58 = vmax.f32 %v867_v51, %v873_v54  ;;  %v874_v59 = vmul.f32 0.01, %v870_v55  ;;  %v5211_v51 = vld [vmem:[%s7032_s9 + $0x94] ss:$8 sps:$4 sm:$0xff]  }
 0x1ef   : > { %v876_v60 = vmax.f32 %v870_v55, %v874_v59  ;;  %v877_v61 = vrot.slane %v875_v58, 7  ;;  %v881_v62 = vrot.slane %v875_v58, 1 }
 0x1f1   : > { %v878_v63 = vrot.slane %v876_v60, 7  ;;  %v882_v0 = vrot.slane %v876_v60, 1  ;;  %v5157_v1 = vpack.i.bf16 %v876_v60, %v875_v58 }
 0x1f3   : > { %v879_v2 = vsel %vm752_vm1, %v877_v61, %v878_v63  ;;  %v880_v4 = vsel %vm752_vm1, %v878_v63, %v877_v61  ;;  %5158 = vrot.lane.b32.xlu0 %v5157_v1, %s7053_s30  ;;  %v883_v5 = vsel %vm757_vm0, %v881_v62, %v882_v0  ;;  %v884_v7 = vsel %vm757_vm0, %v882_v0, %v881_v62  ;;  %v5214_v61 = vld [vmem:[%s7032_s9 + $0xa4] ss:$8 sps:$4 sm:$0xff]  }
 0x1f4   : > { %v887_v8 = vmul.f32 %v883_v5, %v5751_v24  ;;  %v888_v9 = vmul.f32 %v884_v7, %v5757_v25  ;;  %v885_v14 = vmul.f32 %v880_v4, %v5761_v29  ;;  %v886_v15 = vmul.f32 %v879_v2, %v5763_v30  ;;  %v5212_v5 = vld [vmem:[%s7032_s9 + $0xa0] ss:$8 sps:$4 sm:$0xff]   ;;  %v5217_v7 = vld [vmem:[%s7032_s9 + $0xb4] ss:$8 sps:$4 sm:$0xff]  }
 0x1f6   : > { %v5162_v10 = vpack.i.bf16 %v888_v9, %v887_v8  ;;  %v5215_v9 = vld [vmem:[%s7032_s9 + $0xb0] ss:$8 sps:$4 sm:$0xff]  }
 0x1f8   : > { %5163 = vrot.lane.b32.xlu1 %v5162_v10, %s7054_s3  ;;  %v5220_v10 = vld [vmem:[%s7032_s9 + $0xc4] ss:$8 sps:$4 sm:$0xff]  }
 0x265   : > { %v5159_v11 = vpop.permute.xlu0 %5158 }
 0x266   : > { %v5161_v12 = vunpack.i.h.bf16 %v5159_v11  ;;  %v5160_v13 = vunpack.i.l.bf16 %v5159_v11  ;;  %v5218_v11 = vld [vmem:[%s7032_s9 + $0xc0] ss:$8 sps:$4 sm:$0xff]  }
 0x268   : > { %v906_v19 = vsel %vm905_vm8, %v885_v14, %v5160_v13  ;;  %v907_v20 = vsel %vm905_vm8, %v886_v15, %v5161_v12  ;;  %v5223_v12 = vld [vmem:[%s7032_s9 + $0xd4] ss:$8 sps:$4 sm:$0xff]   ;;  %v5221_v13 = vld [vmem:[%s7032_s9 + $0xd0] ss:$8 sps:$4 sm:$0xff]  }
 0x26a   : > { %v5164_v16 = vpop.permute.xlu1 %5163 }
 0x26b   : > { %v5166_v17 = vunpack.i.h.bf16 %v5164_v16  ;;  %v5165_v18 = vunpack.i.l.bf16 %v5164_v16 }
 0x26d   : > { %v909_v21 = vsel %vm908_vm9, %v906_v19, %v5165_v18  ;;  %v910_v22 = vsel %vm908_vm9, %v907_v20, %v5166_v17 }
 0x26e   : > { %v5811_v26 = vpack.c.bf16 %v910_v22, %v909_v21  ;;  %v5226_v22 = vld [vmem:[%s7032_s9 + $0xe4] ss:$8 sps:$4 sm:$0xff]  }
 0x270   : > { %4966 = vmatmul.mubr.msk.bf16.vlgmr.msra.gmra.mrb[0].mxu1 %vm967_vm10, %v5811_v26 }
 0x271   : > { %1348 = vmatprep.mubr.bf16.mxu1 %v5570_v3  ;;  %1317 = vmatpush1.bf16.msra.mxu1 %v5206_v49  ;;  %v5328_v49 = vld [vmem:[%s7034_s11 + $0x84] ss:$8 sps:$4 sm:$0xff]  }
 0x272   : > { %1318 = vmatprep.subr.bf16.mxu1 %v5211_v51  ;;  %v5334_v51 = vld [vmem:[%s7034_s11 + $0x94] ss:$8 sps:$4 sm:$0xff]  }
 0x275   : > { %1319 = vmatpush1.bf16.msra.mxu1 %v5209_v56  ;;  %v5344_v56 = vld [vmem:[%s7034_s11 + $0xb0] ss:$8 sps:$4 sm:$0xff]  }
 0x276   : > { %1320 = vmatprep.subr.bf16.mxu1 %v5214_v61 }
 0x279   : > { %1321 = vmatpush1.bf16.msra.mxu1 %v5212_v5 }
 0x27a   : > { %1322 = vmatprep.subr.bf16.mxu1 %v5217_v7 }
 0x27d   : > { %1323 = vmatpush1.bf16.msra.mxu1 %v5215_v9 }
 0x27e   : > { %1324 = vmatprep.subr.bf16.mxu1 %v5220_v10  ;;  %v5230_v10 = vld [vmem:[%s7032_s9 + $0x100] ss:$8 sps:$4 sm:$0xff]  }
 0x281   : > { %1325 = vmatpush1.bf16.msra.mxu1 %v5218_v11 }
 0x282   : > { %1326 = vmatprep.subr.bf16.mxu1 %v5223_v12 }
 0x285   : > { %1327 = vmatpush1.bf16.msra.mxu1 %v5221_v13 }
 0x286   : > { %1328 = vmatprep.subr.bf16.mxu1 %v5226_v22 }
 0x289   : > { %1329 = vmatpush1.bf16.msra.mxu1 %v5224_v27 }
 0x28a   : > { %1330 = vmatprep.subr.bf16.mxu1 %v5229_v28 }
 0x28d   : > { %1331 = vmatpush1.bf16.msra.mxu1 %v5227_v31  ;;  %v5238_v31 = vld [vmem:[%s7032_s9 + $0x124] ss:$8 sps:$4 sm:$0xff]  }
 0x28e   : > { %1459 = vmatprep.subr.bf16.mxu1 %v5232_v32 }
 0x343   : > { %v1005_v42 = vpop.f32.mrb[0].mxu1 }
 0x344   : > { %v1006_v43 = vadd.f32 %v4272_v40, %v1005_v42  ;;  %v4967_v44 = vpop.f32.mrb[1].mxu1  ;;  %v5302_v42 = vld [vmem:[%s7034_s11 + $0x40] ss:$8 sps:$4 sm:$0xff]  }
 0x345   : > { %v1008_v45 = vpop.f32.mrb[2].mxu1  ;;  %v5308_v44 = vld [vmem:[%s7034_s11 + $0x50] ss:$8 sps:$4 sm:$0xff]  }
 0x346   : > { %v1012_v46 = vmul.f32 0.01, %v1006_v43  ;;  %v1009_v47 = vadd.f32 %v4272_v40, %v1008_v45  ;;  %v4968_v48 = vpop.f32.mrb[3].mxu1  ;;  %v5296_v40 = vld [vmem:[%s7034_s11 + $0x30] ss:$8 sps:$4 sm:$0xff]  }
 0x347   : > { %v5316_v45 = vld [vmem:[%s7034_s11 + $0x64] ss:$8 sps:$4 sm:$0xff]   ;;  %v5320_v48 = vld [vmem:[%s7034_s11 + $0x70] ss:$8 sps:$4 sm:$0xff]  }
 0x348   : > { %v1014_v52 = vmax.f32 %v1006_v43, %v1012_v46  ;;  %v1013_v53 = vmul.f32 0.01, %v1009_v47  ;;  %v5310_v43 = vld [vmem:[%s7034_s11 + $0x54] ss:$8 sps:$4 sm:$0xff]   ;;  %v5314_v46 = vld [vmem:[%s7034_s11 + $0x60] ss:$8 sps:$4 sm:$0xff]  }
 0x34a   : > { %v1015_v54 = vmax.f32 %v1009_v47, %v1013_v53  ;;  %v1016_v55 = vrot.slane %v1014_v52, 7  ;;  %v1020_v57 = vrot.slane %v1014_v52, 1  ;;  %v5322_v47 = vld [vmem:[%s7034_s11 + $0x74] ss:$8 sps:$4 sm:$0xff]   ;;  %v5340_v53 = vld [vmem:[%s7034_s11 + $0xa4] ss:$8 sps:$4 sm:$0xff]  }
 0x34c   : > { %v1017_v58 = vrot.slane %v1015_v54, 7  ;;  %v1021_v59 = vrot.slane %v1015_v54, 1  ;;  %v5167_v60 = vpack.i.bf16 %v1015_v54, %v1014_v52  ;;  %v5332_v52 = vld [vmem:[%s7034_s11 + $0x90] ss:$8 sps:$4 sm:$0xff]   ;;  %v5338_v54 = vld [vmem:[%s7034_s11 + $0xa0] ss:$8 sps:$4 sm:$0xff]  }
 0x34e   : > { %v1018_v62 = vsel %vm752_vm1, %v1016_v55, %v1017_v58  ;;  %v1019_v63 = vsel %vm752_vm1, %v1017_v58, %v1016_v55  ;;  %5168 = vrot.lane.b32.xlu0 %v5167_v60, %s7075_s28  ;;  %v1022_v0 = vsel %vm757_vm0, %v1020_v57, %v1021_v59  ;;  %v1023_v1 = vsel %vm757_vm0, %v1021_v59, %v1020_v57  ;;  %v5346_v55 = vld [vmem:[%s7034_s11 + $0xb4] ss:$8 sps:$4 sm:$0xff]   ;;  %v5352_v57 = vld [vmem:[%s7034_s11 + $0xc4] ss:$8 sps:$4 sm:$0xff]   ;;  %v5350_v58 = vld [vmem:[%s7034_s11 + $0xc0] ss:$8 sps:$4 sm:$0xff]  }
 0x34f   : > { %v1026_v2 = vmul.f32 %v1022_v0, %v5751_v24  ;;  %v1027_v4 = vmul.f32 %v1023_v1, %v5757_v25  ;;  %v1024_v17 = vmul.f32 %v1019_v63, %v5761_v29  ;;  %v1025_v18 = vmul.f32 %v1018_v62, %v5763_v30  ;;  %v4280_v59 = vld [vmem:[%s7076_s8] ss:$0 sm:$0xff] }
 0x351   : > { %v5898_v8 = vpack.c.bf16 %v1027_v4, %v1026_v2 }
 0x353   : > { %4293 = vmatprep.mubr.msk.bf16.mxu0 %vm908_vm9, %v5898_v8 }
 0x3c0   : > { %v5169_v14 = vpop.permute.xlu0 %5168 }
 0x3c1   : > { %v5171_v15 = vunpack.i.h.bf16 %v5169_v14  ;;  %v5170_v16 = vunpack.i.l.bf16 %v5169_v14 }
 0x3c3   : > { %v1036_v19 = vsel %vm908_vm9, %v1024_v17, %v5170_v16  ;;  %v1037_v20 = vsel %vm908_vm9, %v1025_v18, %v5171_v15  ;;  %v5235_v15 = vld [vmem:[%s7032_s9 + $0x114] ss:$8 sps:$4 sm:$0xff]  }
 0x3c4   : > { %v5921_v21 = vpack.c.bf16 %v1037_v20, %v1036_v19  ;;  %v5233_v20 = vld [vmem:[%s7032_s9 + $0x110] ss:$8 sps:$4 sm:$0xff]  }
 0x3c6   : > { %1179 = vmatmul.mubr.bf16.vlgmr.msra.gmra.mrb[4].mxu0 %v5921_v21 }
 0x3c7   : > { %1864 = vmatpush1.bf16.msra.mxu0 %v5278_v33 }
 0x3c8   : > { %1865 = vmatprep.subr.bf16.mxu0 %v5286_v35 }
 0x3cb   : > { %1866 = vmatpush1.bf16.msra.mxu0 %v5284_v36 }
 0x3cc   : > { %1867 = vmatprep.subr.bf16.mxu0 %v5292_v37  ;;  %v5236_v37 = vld [vmem:[%s7032_s9 + $0x120] ss:$8 sps:$4 sm:$0xff]  }
 0x3cf   : > { %1868 = vmatpush1.bf16.msra.mxu0 %v5290_v38  ;;  %v5241_v38 = vld [vmem:[%s7032_s9 + $0x134] ss:$8 sps:$4 sm:$0xff]  }
 0x3d0   : > { %1869 = vmatprep.subr.bf16.mxu0 %v5298_v39  ;;  %v5239_v39 = vld [vmem:[%s7032_s9 + $0x130] ss:$8 sps:$4 sm:$0xff]  }
 0x3d3   : > { %1870 = vmatpush1.bf16.msra.mxu0 %v5296_v40  ;;  %v5244_v40 = vld [vmem:[%s7032_s9 + $0x144] ss:$8 sps:$4 sm:$0xff]  }
 0x3d4   : > { %1871 = vmatprep.subr.bf16.mxu0 %v5304_v41  ;;  %v5242_v41 = vld [vmem:[%s7032_s9 + $0x140] ss:$8 sps:$4 sm:$0xff]  }
 0x3d7   : > { %1872 = vmatpush1.bf16.msra.mxu0 %v5302_v42  ;;  %v5247_v42 = vld [vmem:[%s7032_s9 + $0x154] ss:$8 sps:$4 sm:$0xff]  }
 0x3d8   : > { %1873 = vmatprep.subr.bf16.mxu0 %v5310_v43  ;;  %v5245_v43 = vld [vmem:[%s7032_s9 + $0x150] ss:$8 sps:$4 sm:$0xff]  }
 0x3db   : > { %1874 = vmatpush1.bf16.msra.mxu0 %v5308_v44  ;;  %v5250_v44 = vld [vmem:[%s7032_s9 + $0x164] ss:$8 sps:$4 sm:$0xff]  }
 0x3dc   : > { %1875 = vmatprep.subr.bf16.mxu0 %v5316_v45  ;;  %v5248_v45 = vld [vmem:[%s7032_s9 + $0x160] ss:$8 sps:$4 sm:$0xff]  }
 0x3df   : > { %1876 = vmatpush1.bf16.msra.mxu0 %v5314_v46  ;;  %v5253_v46 = vld [vmem:[%s7032_s9 + $0x174] ss:$8 sps:$4 sm:$0xff]  }
 0x3e0   : > { %1877 = vmatprep.subr.bf16.mxu0 %v5322_v47  ;;  %v5251_v47 = vld [vmem:[%s7032_s9 + $0x170] ss:$8 sps:$4 sm:$0xff]  }
 0x3e3   : > { %1878 = vmatpush1.bf16.msra.mxu0 %v5320_v48  ;;  %v5256_v48 = vld [vmem:[%s7032_s9 + $0x4] ss:$8 sps:$4 sm:$0xff]  }
 0x3e4   : > { %1879 = vmatprep.subr.bf16.mxu0 %v5328_v49  ;;  %v5254_v49 = vld [vmem:[%s7032_s9] ss:$8 sps:$4 sm:$0xff]  }
 0x3e7   : > { %1880 = vmatpush1.bf16.msra.mxu0 %v5326_v50  ;;  %v5259_v50 = vld [vmem:[%s7032_s9 + $0x14] ss:$8 sps:$4 sm:$0xff]  }
 0x3e8   : > { %1881 = vmatprep.subr.bf16.mxu0 %v5334_v51  ;;  %v5257_v51 = vld [vmem:[%s7032_s9 + $0x10] ss:$8 sps:$4 sm:$0xff]  }
 0x3eb   : > { %1882 = vmatpush1.bf16.msra.mxu0 %v5332_v52  ;;  %v5262_v52 = vld [vmem:[%s7032_s9 + $0x24] ss:$8 sps:$4 sm:$0xff]  }
 0x3ec   : > { %1883 = vmatprep.subr.bf16.mxu0 %v5340_v53  ;;  %v5260_v53 = vld [vmem:[%s7032_s9 + $0x20] ss:$8 sps:$4 sm:$0xff]  }
 0x3ef   : > { %1884 = vmatpush1.bf16.msra.mxu0 %v5338_v54  ;;  %v5265_v54 = vld [vmem:[%s7032_s9 + $0x34] ss:$8 sps:$4 sm:$0xff]  }
 0x3f0   : > { %1885 = vmatprep.subr.bf16.mxu0 %v5346_v55  ;;  %v5263_v55 = vld [vmem:[%s7032_s9 + $0x30] ss:$8 sps:$4 sm:$0xff]  }
 0x3f3   : > { %1886 = vmatpush1.bf16.msra.mxu0 %v5344_v56  ;;  %v5268_v56 = vld [vmem:[%s7032_s9 + $0x44] ss:$8 sps:$4 sm:$0xff]  }
 0x3f4   : > { %1887 = vmatprep.subr.bf16.mxu0 %v5352_v57  ;;  %v5266_v57 = vld [vmem:[%s7032_s9 + $0x40] ss:$8 sps:$4 sm:$0xff]  }
 0x3f7   : > { %1888 = vmatpush1.bf16.msra.mxu0 %v5350_v58  ;;  %v5271_v58 = vld [vmem:[%s7032_s9 + $0x54] ss:$8 sps:$4 sm:$0xff]  }
 0x499   : > { %v1180_v60 = vpop.f32.mrb[4].mxu0 }
 0x49a   : > { %v1181_v61 = vadd.f32 %v4280_v59, %v1180_v60  ;;  %v1182_v62 = vpop.f32.mrb[5].mxu0  ;;  %v5274_v60 = vld [vmem:[%s7032_s9 + $0x64] ss:$8 sps:$4 sm:$0xff]  }
 0x49b   : > { %v1183_v63 = vpop.f32.mrb[6].mxu0  ;;  %v5277_v62 = vld [vmem:[%s7032_s9 + $0x74] ss:$8 sps:$4 sm:$0xff]  }
 0x49c   : > { %v1187_v0 = vmul.f32 0.01, %v1181_v61  ;;  %v1184_v1 = vadd.f32 %v4280_v59, %v1183_v63  ;;  %v1185_v2 = vpop.f32.mrb[7].mxu0  ;;  %v5269_v59 = vld [vmem:[%s7032_s9 + $0x50] ss:$8 sps:$4 sm:$0xff]  }
 0x49d   : > { %v5275_v63 = vld [vmem:[%s7032_s9 + $0x70] ss:$8 sps:$4 sm:$0xff]   ;;  %v5289_v2 = vld [vmem:[%s7034_s11 + $0x214] ss:$8 sps:$4 sm:$0xff]  }
 0x49e   : > { %v1189_v4 = vmax.f32 %v1181_v61, %v1187_v0  ;;  %v1188_v5 = vmul.f32 0.01, %v1184_v1  ;;  %v5272_v61 = vld [vmem:[%s7032_s9 + $0x60] ss:$8 sps:$4 sm:$0xff]   ;;  %v5283_v0 = vld [vmem:[%s7034_s11 + $0x204] ss:$8 sps:$4 sm:$0xff]  }
 0x4a0   : > { %v1190_v7 = vmax.f32 %v1184_v1, %v1188_v5  ;;  %v1191_v9 = vrot.slane %v1189_v4, 7  ;;  %v1195_v11 = vrot.slane %v1189_v4, 1  ;;  %v5281_v1 = vld [vmem:[%s7034_s11 + $0x200] ss:$8 sps:$4 sm:$0xff]   ;;  %v5295_v5 = vld [vmem:[%s7034_s11 + $0x224] ss:$8 sps:$4 sm:$0xff]  }
 0x4a2   : > { %v1192_v12 = vrot.slane %v1190_v7, 7  ;;  %v1196_v13 = vrot.slane %v1190_v7, 1  ;;  %v6023_v14 = vpack.c.bf16 %v1190_v7, %v1189_v4  ;;  %v5287_v4 = vld [vmem:[%s7034_s11 + $0x210] ss:$8 sps:$4 sm:$0xff]   ;;  %v5293_v7 = vld [vmem:[%s7034_s11 + $0x220] ss:$8 sps:$4 sm:$0xff]  }
 0x4a4   : > { %1349 = vmatmul.mubr.bf16.vlgmr.msra.gmra.mrb[4].mxu1 %v6023_v14  ;;  %v6031_v16 = vsel %vm757_vm0, %v1195_v11, %v1196_v13  ;;  %v6035_v17 = vsel %vm757_vm0, %v1196_v13, %v1195_v11  ;;  %v6039_v18 = vsel %vm752_vm1, %v1191_v9, %v1192_v12  ;;  %v6043_v19 = vsel %vm752_vm1, %v1192_v12, %v1191_v9  ;;  %v5301_v9 = vld [vmem:[%s7034_s11 + $0x234] ss:$8 sps:$4 sm:$0xff]   ;;  %v5307_v11 = vld [vmem:[%s7034_s11 + $0x244] ss:$8 sps:$4 sm:$0xff]   ;;  %v5305_v12 = vld [vmem:[%s7034_s11 + $0x240] ss:$8 sps:$4 sm:$0xff]  }
 0x4a5   : > { %1460 = vmatpush1.bf16.msra.mxu1 %v5230_v10  ;;  %1491 = vmatprep.mubr.bf16.mxu1 %v5570_v3  ;;  %v1359_v22 = vmul.f32 %v6031_v16, %v5751_v24  ;;  %v1360_v27 = vmul.f32 %v6035_v17, %v5757_v25  ;;  %v6055_v28 = vmul.f32 %v6043_v19, %v5761_v29  ;;  %v5299_v10 = vld [vmem:[%s7034_s11 + $0x230] ss:$8 sps:$4 sm:$0xff]   ;;  %v5313_v13 = vld [vmem:[%s7034_s11 + $0x254] ss:$8 sps:$4 sm:$0xff]  }
 0x4a6   : > { %1461 = vmatprep.subr.bf16.mxu1 %v5235_v15  ;;  %v6062_v32 = vmul.f32 %v6039_v18, %v5763_v30  ;;  %v2957_v33 = vpack.c.bf16 %v6039_v18, %v6043_v19  ;;  %v3171_v34 = vpack.c.bf16 %v6035_v17, %v6031_v16  ;;  %v5311_v15 = vld [vmem:[%s7034_s11 + $0x250] ss:$8 sps:$4 sm:$0xff]   ;;  %v5481_v18 = vld [vmem:[%s7037_s14 + $0x48] sm:$0xff]  }
 0x4a7   : > { %v1361_v35 = vpack.c.bf16 %v1360_v27, %v1359_v22  ;;  %v5317_v22 = vld [vmem:[%s7034_s11 + $0x260] ss:$8 sps:$4 sm:$0xff]   ;;  %v5325_v27 = vld [vmem:[%s7034_s11 + $0x274] ss:$8 sps:$4 sm:$0xff]  }
 0x4a8   : > { %v1201_v36 = vpack.c.bf16 %v6062_v32, %v6055_v28  ;;  %v5323_v28 = vld [vmem:[%s7034_s11 + $0x270] ss:$8 sps:$4 sm:$0xff]   ;;  %v5329_v32 = vld [vmem:[%s7034_s11 + $0x280] ss:$8 sps:$4 sm:$0xff]  }
 0x4a9   : > { %1462 = vmatpush1.bf16.msra.mxu1 %v5233_v20  ;;  %v5319_v20 = vld [vmem:[%s7034_s11 + $0x264] ss:$8 sps:$4 sm:$0xff]   ;;  %v5482_v19 = vld [vmem:[%s7037_s14 + $0x90] sm:$0xff]  }
 0x4aa   : > { %1463 = vmatprep.subr.bf16.mxu1 %v5238_v31  ;;  %v5331_v31 = vld [vmem:[%s7034_s11 + $0x284] ss:$8 sps:$4 sm:$0xff]   ;;  %v5498_v17 = vld [vmem:[%s7039_s16 + $0x50] sm:$0xff]  }
 0x4ab   : > { %v5496_v16 = vld [vmem:[%s7039_s16 + $0x48] sm:$0xff]  }
 0x4ad   : > { %1464 = vmatpush1.bf16.msra.mxu1 %v5236_v37  ;;  %v5343_v37 = vld [vmem:[%s7034_s11 + $0x2a4] ss:$8 sps:$4 sm:$0xff]  }
 0x4ae   : > { %1465 = vmatprep.subr.bf16.mxu1 %v5241_v38  ;;  %v5341_v38 = vld [vmem:[%s7034_s11 + $0x2a0] ss:$8 sps:$4 sm:$0xff]  }
 0x4b1   : > { %1466 = vmatpush1.bf16.msra.mxu1 %v5239_v39  ;;  %v5349_v39 = vld [vmem:[%s7034_s11 + $0x2b4] ss:$8 sps:$4 sm:$0xff]  }
 0x4b2   : > { %1467 = vmatprep.subr.bf16.mxu1 %v5244_v40  ;;  %v5347_v40 = vld [vmem:[%s7034_s11 + $0x2b0] ss:$8 sps:$4 sm:$0xff]  }
 0x4b5   : > { %1468 = vmatpush1.bf16.msra.mxu1 %v5242_v41  ;;  %v5355_v41 = vld [vmem:[%s7034_s11 + $0x2c4] ss:$8 sps:$4 sm:$0xff]  }
 0x4b6   : > { %1469 = vmatprep.subr.bf16.mxu1 %v5247_v42  ;;  %v5353_v42 = vld [vmem:[%s7034_s11 + $0x2c0] ss:$8 sps:$4 sm:$0xff]  }
 0x4b9   : > { %1470 = vmatpush1.bf16.msra.mxu1 %v5245_v43  ;;  %v5358_v43 = vld [vmem:[%s7034_s11 + $0xd4] ss:$8 sps:$4 sm:$0xff]  }
 0x4ba   : > { %1471 = vmatprep.subr.bf16.mxu1 %v5250_v44  ;;  %v5356_v44 = vld [vmem:[%s7034_s11 + $0xd0] ss:$8 sps:$4 sm:$0xff]   ;;  %1889 = vmatprep.subr.bf16.mxu0 %v5358_v43 }
 0x4bb   : > { %1890 = vmatpush1.bf16.msra.mxu0 %v5356_v44 }
 0x4bd   : > { %1472 = vmatpush1.bf16.msra.mxu1 %v5248_v45  ;;  %v5361_v45 = vld [vmem:[%s7034_s11 + $0x2d4] ss:$8 sps:$4 sm:$0xff]  }
 0x4be   : > { %1473 = vmatprep.subr.bf16.mxu1 %v5253_v46  ;;  %v5359_v46 = vld [vmem:[%s7034_s11 + $0x2d0] ss:$8 sps:$4 sm:$0xff]  }
 0x4c1   : > { %1474 = vmatpush1.bf16.msra.mxu1 %v5251_v47  ;;  %v5364_v47 = vld [vmem:[%s7034_s11 + $0xe4] ss:$8 sps:$4 sm:$0xff]  }
 0x4c2   : > { %1582 = vmatprep.subr.bf16.mxu1 %v5256_v48  ;;  %v5362_v48 = vld [vmem:[%s7034_s11 + $0xe0] ss:$8 sps:$4 sm:$0xff]   ;;  %1891 = vmatprep.subr.bf16.mxu0 %v5364_v47 }
 0x4c3   : > { %1892 = vmatpush1.bf16.msra.mxu0 %v5362_v48 }
 0x4c4   : > { %1492 = vmatmul.mubr.bf16.vlgmr.msra.gmra.mrb[4].mxu1 %v1361_v35  ;;  %v5337_v35 = vld [vmem:[%s7034_s11 + $0x294] ss:$8 sps:$4 sm:$0xff]  }
 0x4c5   : > { %1583 = vmatpush1.bf16.msra.mxu1 %v5254_v49  ;;  %1614 = vmatprep.mubr.bf16.mxu1 %v5570_v3  ;;  %v5367_v49 = vld [vmem:[%s7034_s11 + $0x2e4] ss:$8 sps:$4 sm:$0xff]  }
 0x4c6   : > { %1584 = vmatprep.subr.bf16.mxu1 %v5259_v50  ;;  %v5365_v50 = vld [vmem:[%s7034_s11 + $0x2e0] ss:$8 sps:$4 sm:$0xff]  }
 0x4c9   : > { %1585 = vmatpush1.bf16.msra.mxu1 %v5257_v51  ;;  %v5370_v51 = vld [vmem:[%s7034_s11 + $0xf4] ss:$8 sps:$4 sm:$0xff]  }
 0x4ca   : > { %1586 = vmatprep.subr.bf16.mxu1 %v5262_v52  ;;  %v5368_v52 = vld [vmem:[%s7034_s11 + $0xf0] ss:$8 sps:$4 sm:$0xff]   ;;  %1893 = vmatprep.subr.bf16.mxu0 %v5370_v51 }
 0x4cb   : > { %1894 = vmatpush1.bf16.msra.mxu0 %v5368_v52 }
 0x4cd   : > { %1587 = vmatpush1.bf16.msra.mxu1 %v5260_v53  ;;  %v5371_v53 = vld [vmem:[%s7034_s11 + $0x2f0] ss:$8 sps:$4 sm:$0xff]  }
 0x4ce   : > { %1588 = vmatprep.subr.bf16.mxu1 %v5265_v54  ;;  %v5373_v54 = vld [vmem:[%s7034_s11 + $0x2f4] ss:$8 sps:$4 sm:$0xff]  }
 0x4d1   : > { %1589 = vmatpush1.bf16.msra.mxu1 %v5263_v55  ;;  %v5376_v55 = vld [vmem:[%s7034_s11 + $0x104] ss:$8 sps:$4 sm:$0xff]  }
 0x4d2   : > { %1590 = vmatprep.subr.bf16.mxu1 %v5268_v56  ;;  %2105 = vmatprep.subr.bf16.mxu0 %v5376_v55  ;;  %v1633_v56 = vsub.s32 0, %v5725_v6  ;;  %v5382_v55 = vld [vmem:[%s7034_s11 + $0x124] ss:$8 sps:$4 sm:$0xff]  }
 0x4d5   : > { %1591 = vmatpush1.bf16.msra.mxu1 %v5266_v57  ;;  %v1629_v57 = vld [vmem:[%s7033_s10] sm:$0x3] }
 0x4d6   : > { %1592 = vmatprep.subr.bf16.mxu1 %v5271_v58  ;;  %v1637_v58 = vsub.s32 1, %v5725_v6 }
 0x4d9   : > { %1593 = vmatpush1.bf16.msra.mxu1 %v5269_v59  ;;  %v1634_v59 = vrot.slane %v1629_v57, %v1633_v56 }
 0x4da   : > { %1594 = vmatprep.subr.bf16.mxu1 %v5274_v60  ;;  %v1638_v60 = vrot.slane %v1629_v57, %v1637_v58  ;;  %v5380_v57 = vld [vmem:[%s7034_s11 + $0x120] ss:$8 sps:$4 sm:$0xff]  }
 0x4dd   : > { %1595 = vmatpush1.bf16.msra.mxu1 %v5272_v61 }
 0x4de   : > { %1596 = vmatprep.subr.bf16.mxu1 %v5277_v62 }
 0x4e1   : > { %1597 = vmatpush1.bf16.msra.mxu1 %v5275_v63 }
 0x4e2   : > { %2343 = vmatprep.subr.bf16.mxu1 %v5283_v0 }
 0x4e4   : > { %1615 = vmatmul.mubr.bf16.vlgmr.msra.gmra.mrb[4].mxu1 %v1201_v36  ;;  %v5335_v36 = vld [vmem:[%s7034_s11 + $0x290] ss:$8 sps:$4 sm:$0xff]  }
 0x4e5   : > { %2344 = vmatpush1.bf16.msra.mxu1 %v5281_v1 }
 0x4e6   : > { %2345 = vmatprep.subr.bf16.mxu1 %v5289_v2 }
 0x4e9   : > { %2346 = vmatpush1.bf16.msra.mxu1 %v5287_v4 }
 0x4ea   : > { %2347 = vmatprep.subr.bf16.mxu1 %v5295_v5 }
 0x4ed   : > { %2348 = vmatpush1.bf16.msra.mxu1 %v5293_v7 }
 0x4ee   : > { %2349 = vmatprep.subr.bf16.mxu1 %v5301_v9 }
 0x4f1   : > { %2350 = vmatpush1.bf16.msra.mxu1 %v5299_v10 }
 0x4f2   : > { %2351 = vmatprep.subr.bf16.mxu1 %v5307_v11 }
 0x4f5   : > { %2352 = vmatpush1.bf16.msra.mxu1 %v5305_v12 }
 0x4f6   : > { %2353 = vmatprep.subr.bf16.mxu1 %v5313_v13 }
 0x4f9   : > { %2354 = vmatpush1.bf16.msra.mxu1 %v5311_v15 }
 0x4fa   : > { %2355 = vmatprep.subr.bf16.mxu1 %v5319_v20 }
 0x4fd   : > { %2356 = vmatpush1.bf16.msra.mxu1 %v5317_v22 }
 0x4fe   : > { %2357 = vmatprep.subr.bf16.mxu1 %v5325_v27 }
 0x501   : > { %2358 = vmatpush1.bf16.msra.mxu1 %v5323_v28 }
 0x502   : > { %2359 = vmatprep.subr.bf16.mxu1 %v5331_v31 }
 0x505   : > { %2360 = vmatpush1.bf16.msra.mxu1 %v5329_v32 }
 0x506   : > { %2361 = vmatprep.subr.bf16.mxu1 %v5337_v35 }
 0x509   : > { %2362 = vmatpush1.bf16.msra.mxu1 %v5335_v36 }
 0x50a   : > { %2363 = vmatprep.subr.bf16.mxu1 %v5343_v37 }
 0x50d   : > { %2364 = vmatpush1.bf16.msra.mxu1 %v5341_v38 }
 0x50e   : > { %2365 = vmatprep.subr.bf16.mxu1 %v5349_v39 }
 0x511   : > { %2366 = vmatpush1.bf16.msra.mxu1 %v5347_v40 }
 0x512   : > { %2367 = vmatprep.subr.bf16.mxu1 %v5355_v41 }
 0x515   : > { %2368 = vmatpush1.bf16.msra.mxu1 %v5353_v42 }
 0x516   : > { %2369 = vmatprep.subr.bf16.mxu1 %v5361_v45 }
 0x519   : > { %2370 = vmatpush1.bf16.msra.mxu1 %v5359_v46 }
 0x51a   : > { %2371 = vmatprep.subr.bf16.mxu1 %v5367_v49  ;;  %v5374_v49 = vld [vmem:[%s7034_s11 + $0x100] ss:$8 sps:$4 sm:$0xff]  }
 0x51d   : > { %2372 = vmatpush1.bf16.msra.mxu1 %v5365_v50 }
 0x51e   : > { %2373 = vmatprep.subr.bf16.mxu1 %v5373_v54  ;;  %v5377_v54 = vld [vmem:[%s7034_s11 + $0x110] ss:$8 sps:$4 sm:$0xff]  }
 0x521   : > { %2374 = vmatpush1.bf16.msra.mxu1 %v5371_v53  ;;  %v5379_v53 = vld [vmem:[%s7034_s11 + $0x114] ss:$8 sps:$4 sm:$0xff]  }
 0x5b7   : > { %v1616_v61 = vpop.f32.mrb[4].mxu1 }
 0x5b8   : > { %v1641_v62 = vadd.f32 %v1634_v59, %v1616_v61  ;;  %v1618_v63 = vpop.f32.mrb[5].mxu1  ;;  %v5388_v61 = vld [vmem:[%s7034_s11 + $0x144] ss:$8 sps:$4 sm:$0xff]  }
 0x5b9   : > { %v1642_v0 = vadd.f32 %v1638_v60, %v1618_v63  ;;  %v1620_v1 = vpop.f32.mrb[6].mxu1  ;;  %v5391_v63 = vld [vmem:[%s7034_s11 + $0x154] ss:$8 sps:$4 sm:$0xff]  }
 0x5ba   : > { %v1645_v2 = vmul.f32 0.01, %v1641_v62  ;;  %v1643_v4 = vadd.f32 %v1634_v59, %v1620_v1  ;;  %v1622_v5 = vpop.f32.mrb[7].mxu1  ;;  %v5385_v59 = vld [vmem:[%s7034_s11 + $0x134] ss:$8 sps:$4 sm:$0xff]  }
 0x5bb   : > { %v1646_v7 = vmul.f32 0.01, %v1642_v0  ;;  %v1644_v9 = vadd.f32 %v1638_v60, %v1622_v5  ;;  %v5383_v60 = vld [vmem:[%s7034_s11 + $0x130] ss:$8 sps:$4 sm:$0xff]   ;;  %v5394_v1 = vld [vmem:[%s7034_s11 + $0x164] ss:$8 sps:$4 sm:$0xff]  }
 0x5bc   : > { %v6278_v10 = vmax.f32 %v1641_v62, %v1645_v2  ;;  %v1647_v11 = vmul.f32 0.01, %v1643_v4  ;;  %v5386_v62 = vld [vmem:[%s7034_s11 + $0x140] ss:$8 sps:$4 sm:$0xff]   ;;  %v5395_v5 = vld [vmem:[%s7034_s11 + $0x170] ss:$8 sps:$4 sm:$0xff]  }
 0x5bd   : > { %v1650_v12 = vmax.f32 %v1642_v0, %v1646_v7  ;;  %v1648_v13 = vmul.f32 0.01, %v1644_v9  ;;  %v5389_v0 = vld [vmem:[%s7034_s11 + $0x150] ss:$8 sps:$4 sm:$0xff]   ;;  %v5392_v2 = vld [vmem:[%s7034_s11 + $0x160] ss:$8 sps:$4 sm:$0xff]  }
 0x5be   : > { %v6280_v15 = vmax.f32 %v1643_v4, %v1647_v11  ;;  %v1653_v20 = vrot.slane %v6278_v10, 7  ;;  %v1661_v22 = vrot.slane %v6278_v10, 1  ;;  %v5397_v4 = vld [vmem:[%s7034_s11 + $0x174] ss:$8 sps:$4 sm:$0xff]   ;;  %v5400_v7 = vld [vmem:[%s7034_s11 + $0x184] ss:$8 sps:$4 sm:$0xff]  }
 0x5bf   : > { %v1652_v27 = vmax.f32 %v1644_v9, %v1648_v13  ;;  %v1654_v28 = vrot.slane %v1650_v12, 7  ;;  %v1662_v36 = vrot.slane %v1650_v12, 1  ;;  %v5398_v9 = vld [vmem:[%s7034_s11 + $0x180] ss:$8 sps:$4 sm:$0xff]   ;;  %v5403_v11 = vld [vmem:[%s7034_s11 + $0x194] ss:$8 sps:$4 sm:$0xff]  }
 0x5c0   : > { %v1655_v31 = vrot.slane %v6280_v15, 7  ;;  %v1663_v32 = vrot.slane %v6280_v15, 1  ;;  %v1910_v35 = vpack.c.bf16 %v6280_v15, %v6278_v10  ;;  %v5406_v13 = vld [vmem:[%s7034_s11 + $0x1a4] ss:$8 sps:$4 sm:$0xff]  }
 0x5c1   : > { %v1656_v37 = vrot.slane %v1652_v27, 7  ;;  %v1664_v38 = vrot.slane %v1652_v27, 1  ;;  %v1911_v39 = vpack.c.bf16 %v1652_v27, %v1650_v12  ;;  %v5401_v12 = vld [vmem:[%s7034_s11 + $0x190] ss:$8 sps:$4 sm:$0xff]   ;;  %v5426_v10 = vld [vmem:[%s7036_s13 + $0xc8] sm:$0xff]  }
 0x5c2   : > { %v1657_v40 = vsel %vm752_vm1, %v1653_v20, %v1655_v31  ;;  %v1659_v41 = vsel %vm752_vm1, %v1655_v31, %v1653_v20  ;;  %v1665_v42 = vsel %vm757_vm0, %v1661_v22, %v1663_v32  ;;  %v1667_v43 = vsel %vm757_vm0, %v1663_v32, %v1661_v22  ;;  %v5404_v20 = vld [vmem:[%s7034_s11 + $0x1a0] ss:$8 sps:$4 sm:$0xff]   ;;  %v5409_v22 = vld [vmem:[%s7034_s11 + $0x1b4] ss:$8 sps:$4 sm:$0xff]   ;;  %v5407_v27 = vld [vmem:[%s7034_s11 + $0x1b0] ss:$8 sps:$4 sm:$0xff]  }
 0x5c3   : > { %v1658_v44 = vsel %vm752_vm1, %v1654_v28, %v1656_v37  ;;  %v1660_v45 = vsel %vm752_vm1, %v1656_v37, %v1654_v28  ;;  %v1666_v46 = vsel %vm757_vm0, %v1662_v36, %v1664_v38  ;;  %v1668_v47 = vsel %vm757_vm0, %v1664_v38, %v1662_v36  ;;  %v5412_v28 = vld [vmem:[%s7034_s11 + $0x1c4] ss:$8 sps:$4 sm:$0xff]   ;;  %v5410_v31 = vld [vmem:[%s7034_s11 + $0x1c0] ss:$8 sps:$4 sm:$0xff]   ;;  %v5415_v32 = vld [vmem:[%s7034_s11 + $0x1d4] ss:$8 sps:$4 sm:$0xff]  }
 0x5c4   : > { %v1670_v48 = vpack.c.bf16 %v1658_v44, %v1660_v45  ;;  %v2149_v50 = vpack.c.bf16 %v1668_v47, %v1666_v46  ;;  %v1669_v51 = vpack.c.bf16 %v1657_v40, %v1659_v41  ;;  %v2148_v52 = vpack.c.bf16 %v1667_v43, %v1665_v42  ;;  %v5413_v36 = vld [vmem:[%s7034_s11 + $0x1d0] ss:$8 sps:$4 sm:$0xff]   ;;  %v5418_v37 = vld [vmem:[%s7034_s11 + $0x1e4] ss:$8 sps:$4 sm:$0xff]   ;;  %v5416_v38 = vld [vmem:[%s7034_s11 + $0x1e0] ss:$8 sps:$4 sm:$0xff]  }
 0x5c5   : > { %v5419_v40 = vld [vmem:[%s7034_s11 + $0x1f0] ss:$8 sps:$4 sm:$0xff]   ;;  %v5422_v41 = vld [vmem:[%s7036_s13 + $0xc0] sm:$0xff]   ;;  %v5428_v15 = vld [vmem:[%s7036_s13 + $0x48] sm:$0xff]  }
 0x5c6   : > { %1895 = vmatprep.mubr.bf16.mxu0 %v1670_v48  ;;  %2375 = vmatprep.mubr.bf16.mxu1 %v2149_v50  ;;  %v5423_v42 = vld [vmem:[%s7036_s13 + $0x80] sm:$0xff]   ;;  %v5429_v45 = vld [vmem:[%s7036_s13 + $0x8] sm:$0xff]   ;;  %v5430_v46 = vld [vmem:[%s7036_s13 + $0xd0] sm:$0xff]  }
 0x5c7   : > { %1896 = vmatmul.mubr.bf16.vlgmr.msra.gmra.mrb[8].mxu0 %v1669_v51  ;;  %2376 = vmatmul.mubr.bf16.vlgmr.msra.gmra.mrb[8].mxu1 %v2148_v52  ;;  %v5424_v43 = vld [vmem:[%s7036_s13 + $0x40] sm:$0xff]   ;;  %v5432_v47 = vld [vmem:[%s7036_s13 + $0x50] sm:$0xff]   ;;  %v5434_v50 = vld [vmem:[%s7036_s13 + $0xd8] sm:$0xff]  }
 0x5c8   : > { %2106 = vmatpush1.bf16.msra.mxu0 %v5374_v49  ;;  %2137 = vmatprep.mubr.bf16.mxu0 %v1911_v39  ;;  %v5421_v39 = vld [vmem:[%s7034_s11 + $0x1f4] ss:$8 sps:$4 sm:$0xff]   ;;  %v5425_v44 = vld [vmem:[%s7036_s13] sm:$0xff]  }
 0x5c9   : > { %2107 = vmatprep.subr.bf16.mxu0 %v5379_v53  ;;  %4835 = vmatprep.subr.bf16.mxu1 %v5422_v41  ;;  %v5431_v48 = vld [vmem:[%s7036_s13 + $0x90] sm:$0xff]   ;;  %v5436_v51 = vld [vmem:[%s7036_s13 + $0x58] sm:$0xff]  }
 0x5ca   : > { %4836 = vmatpush3.bf16.msra.mxu1 %v5423_v42  ;;  %v5433_v49 = vld [vmem:[%s7036_s13 + $0x10] sm:$0xff]   ;;  %v5435_v52 = vld [vmem:[%s7036_s13 + $0x98] sm:$0xff]  }
 0x5cb   : > { %4837 = vmatprep.subr.bf16.mxu1 %v5426_v10  ;;  %v5437_v53 = vld [vmem:[%s7036_s13 + $0x18] sm:$0xff]  }
 0x5cc   : > { %2108 = vmatpush1.bf16.msra.mxu0 %v5377_v54  ;;  %v5438_v54 = vld [vmem:[%s7036_s13 + $0xe0] sm:$0xff]  }
 0x5cd   : > { %2109 = vmatprep.subr.bf16.mxu0 %v5382_v55  ;;  %v5439_v55 = vld [vmem:[%s7036_s13 + $0xa0] sm:$0xff]  }
 0x5d0   : > { %2110 = vmatpush1.bf16.msra.mxu0 %v5380_v57  ;;  %v5440_v57 = vld [vmem:[%s7036_s13 + $0x60] sm:$0xff]  }
 0x5d1   : > { %2111 = vmatprep.subr.bf16.mxu0 %v5385_v59  ;;  %v5441_v59 = vld [vmem:[%s7036_s13 + $0x20] sm:$0xff]  }
 0x5d4   : > { %2112 = vmatpush1.bf16.msra.mxu0 %v5383_v60  ;;  %v5442_v60 = vld [vmem:[%s7036_s13 + $0xe8] sm:$0xff]  }
 0x5d5   : > { %2113 = vmatprep.subr.bf16.mxu0 %v5388_v61  ;;  %v5443_v61 = vld [vmem:[%s7036_s13 + $0xa8] sm:$0xff]  }
 0x5d8   : > { %2114 = vmatpush1.bf16.msra.mxu0 %v5386_v62  ;;  %v5444_v62 = vld [vmem:[%s7036_s13 + $0x68] sm:$0xff]  }
 0x5d9   : > { %2115 = vmatprep.subr.bf16.mxu0 %v5391_v63  ;;  %v5445_v63 = vld [vmem:[%s7036_s13 + $0x28] sm:$0xff]  }
 0x5dc   : > { %2116 = vmatpush1.bf16.msra.mxu0 %v5389_v0  ;;  %v5446_v0 = vld [vmem:[%s7036_s13 + $0xf0] sm:$0xff]  }
 0x5dd   : > { %2117 = vmatprep.subr.bf16.mxu0 %v5394_v1  ;;  %v5447_v1 = vld [vmem:[%s7036_s13 + $0xb0] sm:$0xff]  }
 0x5e0   : > { %2118 = vmatpush1.bf16.msra.mxu0 %v5392_v2  ;;  %v5448_v2 = vld [vmem:[%s7036_s13 + $0x70] sm:$0xff]  }
 0x5e1   : > { %2119 = vmatprep.subr.bf16.mxu0 %v5397_v4  ;;  %v5449_v4 = vld [vmem:[%s7036_s13 + $0x30] sm:$0xff]  }
 0x5e4   : > { %2120 = vmatpush1.bf16.msra.mxu0 %v5395_v5  ;;  %v5450_v5 = vld [vmem:[%s7036_s13 + $0xf8] sm:$0xff]  }
 0x5e5   : > { %2121 = vmatprep.subr.bf16.mxu0 %v5400_v7  ;;  %v5451_v7 = vld [vmem:[%s7036_s13 + $0xb8] sm:$0xff]  }
 0x5e8   : > { %2122 = vmatpush1.bf16.msra.mxu0 %v5398_v9  ;;  %v5452_v9 = vld [vmem:[%s7036_s13 + $0x78] sm:$0xff]  }
 0x5e9   : > { %2123 = vmatprep.subr.bf16.mxu0 %v5403_v11  ;;  %v5453_v11 = vld [vmem:[%s7036_s13 + $0x38] sm:$0xff]  }
 0x5ec   : > { %2124 = vmatpush1.bf16.msra.mxu0 %v5401_v12  ;;  %v5455_v12 = vld [vmem:[%s7036_s13 + $0x140] sm:$0xff]  }
 0x5ed   : > { %2125 = vmatprep.subr.bf16.mxu0 %v5406_v13 }
 0x5f0   : > { %2126 = vmatpush1.bf16.msra.mxu0 %v5404_v20 }
 0x5f1   : > { %2127 = vmatprep.subr.bf16.mxu0 %v5409_v22 }
 0x5f4   : > { %2128 = vmatpush1.bf16.msra.mxu0 %v5407_v27 }
 0x5f5   : > { %2129 = vmatprep.subr.bf16.mxu0 %v5412_v28 }
 0x5f8   : > { %2130 = vmatpush1.bf16.msra.mxu0 %v5410_v31 }
 0x5f9   : > { %2131 = vmatprep.subr.bf16.mxu0 %v5415_v32 }
 0x5fc   : > { %2132 = vmatpush1.bf16.msra.mxu0 %v5413_v36 }
 0x5fd   : > { %2133 = vmatprep.subr.bf16.mxu0 %v5418_v37  ;;  %v2398_v37 = vld [vmem:[%s7035_s12] sm:$0x3] }
 0x600   : > { %2134 = vmatpush1.bf16.msra.mxu0 %v5416_v38 }
 0x601   : > { %2135 = vmatprep.subr.bf16.mxu0 %v5421_v39 }
 0x604   : > { %2136 = vmatpush1.bf16.msra.mxu0 %v5419_v40 }
 0x605   : > { %4813 = vmatprep.subr.bf16.mxu0 %v5424_v43 }
 0x607   : > { %2138 = vmatmul.mubr.bf16.vlgmr.msra.gmra.mrb[12].mxu0 %v1910_v35  ;;  %v5427_v35 = vld [vmem:[%s7036_s13 + $0x88] sm:$0xff]  }
 0x608   : > { %4814 = vmatpush3.bf16.msra.mxu0 %v5425_v44  ;;  %4838 = vmatpush3.bf16.msra.mxu1 %v5427_v35  ;;  %v2403_v44 = vrot.slane %v2398_v37, %v1633_v56 }
 0x609   : > { %4815 = vmatprep.subr.bf16.mxu0 %v5428_v15  ;;  %4839 = vmatprep.subr.bf16.mxu1 %v5430_v46  ;;  %v2407_v46 = vrot.slane %v2398_v37, %v1637_v58 }
 0x60c   : > { %4816 = vmatpush3.bf16.msra.mxu0 %v5429_v45  ;;  %4840 = vmatpush3.bf16.msra.mxu1 %v5431_v48 }
 0x60d   : > { %4817 = vmatprep.subr.bf16.mxu0 %v5432_v47  ;;  %4841 = vmatprep.subr.bf16.mxu1 %v5434_v50 }
 0x610   : > { %4818 = vmatpush3.bf16.msra.mxu0 %v5433_v49  ;;  %4842 = vmatpush3.bf16.msra.mxu1 %v5435_v52 }
 0x611   : > { %4819 = vmatprep.subr.bf16.mxu0 %v5436_v51  ;;  %4843 = vmatprep.subr.bf16.mxu1 %v5438_v54 }
 0x614   : > { %4820 = vmatpush3.bf16.msra.mxu0 %v5437_v53  ;;  %4844 = vmatpush3.bf16.msra.mxu1 %v5439_v55 }
 0x615   : > { %4821 = vmatprep.subr.bf16.mxu0 %v5440_v57  ;;  %4845 = vmatprep.subr.bf16.mxu1 %v5442_v60 }
 0x618   : > { %4822 = vmatpush3.bf16.msra.mxu0 %v5441_v59  ;;  %4846 = vmatpush3.bf16.msra.mxu1 %v5443_v61 }
 0x619   : > { %4823 = vmatprep.subr.bf16.mxu0 %v5444_v62  ;;  %4847 = vmatprep.subr.bf16.mxu1 %v5446_v0 }
 0x61c   : > { %4824 = vmatpush3.bf16.msra.mxu0 %v5445_v63  ;;  %4848 = vmatpush3.bf16.msra.mxu1 %v5447_v1 }
 0x61d   : > { %4825 = vmatprep.subr.bf16.mxu0 %v5448_v2  ;;  %4849 = vmatprep.subr.bf16.mxu1 %v5450_v5 }
 0x620   : > { %4826 = vmatpush3.bf16.msra.mxu0 %v5449_v4  ;;  %4850 = vmatpush3.bf16.msra.mxu1 %v5451_v7 }
 0x621   : > { %4969 = vmatprep.subr.bf16.mxu1 %v5573_v23  ;;  %4827 = vmatprep.subr.bf16.mxu0 %v5452_v9 }
 0x624   : > { %4828 = vmatpush3.bf16.msra.mxu0 %v5453_v11 }
 0x625   : > { %4857 = vmatprep.subr.bf16.mxu0 %v5455_v12 }
 0x69a   : > { %v1897_v13 = vpop.f32.mrb[8].mxu0  ;;  %v2377_v20 = vpop.f32.mrb[8].mxu1 }
 0x69b   : > { %v1899_v22 = vpop.f32.mrb[9].mxu0  ;;  %v2379_v27 = vpop.f32.mrb[9].mxu1  ;;  %v1906_v38 = vmul.f32 %v1897_v13, %v5761_v29  ;;  %v2386_v41 = vmul.f32 %v2377_v20, %v5751_v24 }
 0x69c   : > { %v1901_v28 = vpop.f32.mrb[10].mxu0  ;;  %v2381_v31 = vpop.f32.mrb[10].mxu1  ;;  %v1907_v39 = vmul.f32 %v1899_v22, %v5761_v29  ;;  %v2387_v15 = vmul.f32 %v2379_v27, %v5751_v24  ;;  %v5454_v27 = vld [vmem:[%s7037_s14] sm:$0xff]  }
 0x69d   : > { %v1903_v32 = vpop.f32.mrb[11].mxu0  ;;  %v2383_v36 = vpop.f32.mrb[11].mxu1  ;;  %v1908_v42 = vmul.f32 %v1901_v28, %v5763_v30  ;;  %v2388_v48 = vmul.f32 %v2381_v31, %v5757_v25 }
 0x69e   : > { %v1909_v35 = vmul.f32 %v1903_v32, %v5763_v30  ;;  %v2389_v52 = vmul.f32 %v2383_v36, %v5757_v25 }
 0x6da   : > { %v2139_v40 = vpop.f32.mrb[12].mxu0 }
 0x6db   : > { %v2390_v43 = vadd.f32 %v2139_v40, %v1906_v38  ;;  %v2141_v10 = vpop.f32.mrb[13].mxu0 }
 0x6dc   : > { %v2391_v45 = vadd.f32 %v2141_v10, %v1907_v39  ;;  %v2143_v47 = vpop.f32.mrb[14].mxu0  ;;  %v5456_v10 = vld [vmem:[%s7036_s13 + $0x100] sm:$0xff]  }
 0x6dd   : > { %v2394_v49 = vadd.f32 %v2390_v43, %v2386_v41  ;;  %v2392_v50 = vadd.f32 %v2143_v47, %v1908_v42  ;;  %v2145_v51 = vpop.f32.mrb[15].mxu0  ;;  %v5458_v47 = vld [vmem:[%s7036_s13 + $0x148] sm:$0xff]  }
 0x6de   : > { %v2395_v53 = vadd.f32 %v2391_v45, %v2387_v15  ;;  %v2393_v54 = vadd.f32 %v2145_v51, %v1909_v35  ;;  %v5462_v51 = vld [vmem:[%s7036_s13 + $0x110] sm:$0xff]  }
 0x6df   : > { %v2410_v56 = vadd.f32 %v2403_v44, %v2394_v49  ;;  %v2396_v55 = vadd.f32 %v2392_v50, %v2388_v48  ;;  %v5459_v48 = vld [vmem:[%s7036_s13 + $0x108] sm:$0xff]   ;;  %v5460_v49 = vld [vmem:[%s7037_s14 + $0x10] sm:$0xff]  }
 0x6e0   : > { %v2411_v57 = vadd.f32 %v2407_v46, %v2395_v53  ;;  %v2397_v59 = vadd.f32 %v2393_v54, %v2389_v52  ;;  %v5461_v50 = vld [vmem:[%s7036_s13 + $0x150] sm:$0xff]   ;;  %v5463_v52 = vld [vmem:[%s7037_s14 + $0x18] sm:$0xff]  }
 0x6e1   : > { %v2414_v60 = vmul.f32 0.01, %v2410_v56  ;;  %v2412_v61 = vadd.f32 %v2403_v44, %v2396_v55  ;;  %v5464_v53 = vld [vmem:[%s7036_s13 + $0x158] sm:$0xff]   ;;  %v5467_v55 = vld [vmem:[%s7036_s13 + $0x160] sm:$0xff]  }
 0x6e2   : > { %v2415_v62 = vmul.f32 0.01, %v2411_v57  ;;  %v2413_v63 = vadd.f32 %v2407_v46, %v2397_v59  ;;  %v5457_v46 = vld [vmem:[%s7037_s14 + $0x8] sm:$0xff]   ;;  %v5465_v54 = vld [vmem:[%s7036_s13 + $0x118] sm:$0xff]  }
 0x6e3   : > { %v2418_v0 = vmax.f32 %v2410_v56, %v2414_v60  ;;  %v2416_v58 = vmul.f32 0.01, %v2412_v61  ;;  %v5466_v56 = vld [vmem:[%s7037_s14 + $0x20] sm:$0xff]   ;;  %v5469_v59 = vld [vmem:[%s7037_s14 + $0x28] sm:$0xff]  }
 0x6e4   : > { %v2419_v1 = vmax.f32 %v2411_v57, %v2415_v62  ;;  %v2417_v2 = vmul.f32 0.01, %v2413_v63  ;;  %v5468_v57 = vld [vmem:[%s7036_s13 + $0x120] sm:$0xff]   ;;  %v5470_v60 = vld [vmem:[%s7036_s13 + $0x168] sm:$0xff]   ;;  %v5472_v62 = vld [vmem:[%s7037_s14 + $0x30] sm:$0xff]  }
 0x6e5   : > { %v2420_v4 = vmax.f32 %v2412_v61, %v2416_v58  ;;  %v2422_v5 = vrot.slane %v2418_v0, 7  ;;  %v2430_v7 = vrot.slane %v2418_v0, 1  ;;  %v5471_v61 = vld [vmem:[%s7036_s13 + $0x128] sm:$0xff]   ;;  %v5475_v58 = vld [vmem:[%s7037_s14 + $0x38] sm:$0xff]  }
 0x6e6   : > { %v2421_v9 = vmax.f32 %v2413_v63, %v2417_v2  ;;  %v2423_v20 = vrot.slane %v2419_v1, 7  ;;  %v2431_v31 = vrot.slane %v2419_v1, 1  ;;  %v5473_v63 = vld [vmem:[%s7036_s13 + $0x170] sm:$0xff]   ;;  %v5477_v2 = vld [vmem:[%s7036_s13 + $0x138] sm:$0xff]  }
 0x6e7   : > { %v2424_v11 = vrot.slane %v2420_v4, 7  ;;  %v2432_v12 = vrot.slane %v2420_v4, 1  ;;  %v2611_v13 = vpack.c.bf16 %v2420_v4, %v2418_v0  ;;  %v5474_v0 = vld [vmem:[%s7036_s13 + $0x130] sm:$0xff]   ;;  %v5478_v4 = vld [vmem:[%s7037_s14 + $0x80] sm:$0xff]  }
 0x6e8   : > { %v2612_v22 = vpack.c.bf16 %v2421_v9, %v2419_v1  ;;  %v2425_v28 = vrot.slane %v2421_v9, 7  ;;  %v2433_v32 = vrot.slane %v2421_v9, 1  ;;  %v5476_v1 = vld [vmem:[%s7036_s13 + $0x178] sm:$0xff]  }
 0x6e9   : > { %v2426_v36 = vsel %vm752_vm1, %v2422_v5, %v2424_v11  ;;  %v2428_v37 = vsel %vm752_vm1, %v2424_v11, %v2422_v5  ;;  %v6524_v38 = vsel %vm757_vm0, %v2430_v7, %v2432_v12  ;;  %v6528_v39 = vsel %vm757_vm0, %v2432_v12, %v2430_v7  ;;  %v5479_v5 = vld [vmem:[%s7037_s14 + $0x40] sm:$0xff]   ;;  %v5480_v7 = vld [vmem:[%s7037_s14 + $0x88] sm:$0xff]   ;;  %v5484_v9 = vld [vmem:[%s7037_s14 + $0x98] sm:$0xff]  }
 0x6ea   : > { %2774 = vmatprep.mubr.bf16.mxu1 %v2612_v22  ;;  %v2427_v40 = vsel %vm752_vm1, %v2423_v20, %v2425_v28  ;;  %v2429_v41 = vsel %vm752_vm1, %v2425_v28, %v2423_v20  ;;  %v2438_v42 = vpack.c.bf16 %v2426_v36, %v2428_v37  ;;  %v2435_v43 = vsel %vm757_vm0, %v2431_v31, %v2433_v32  ;;  %v5485_v11 = vld [vmem:[%s7037_s14 + $0x58] sm:$0xff]   ;;  %v5486_v12 = vld [vmem:[%s7037_s14 + $0xa0] sm:$0xff]   ;;  %v5488_v20 = vld [vmem:[%s7037_s14 + $0xa8] sm:$0xff]  }
 0x6eb   : > { %2775 = vmatmul.mubr.bf16.vlgmr.msra.gmra.mrb[12].mxu1 %v2611_v13  ;;  %v2439_v44 = vpack.c.bf16 %v2427_v40, %v2429_v41  ;;  %v2437_v15 = vsel %vm757_vm0, %v2433_v32, %v2431_v31  ;;  %v2783_v35 = vpack.c.bf16 %v6528_v39, %v6524_v38  ;;  %v5487_v13 = vld [vmem:[%s7037_s14 + $0x60] sm:$0xff]   ;;  %v5489_v22 = vld [vmem:[%s7037_s14 + $0x68] sm:$0xff]   ;;  %v5491_v28 = vld [vmem:[%s7037_s14 + $0x70] sm:$0xff]  }
 0x6ec   : > { %4970 = vmatpush3.bf16.msra.mxu1 %v5454_v27  ;;  %v2784_v45 = vpack.c.bf16 %v2437_v15, %v2435_v43  ;;  %4985 = vmatprep.mubr.msk.bf16.mxu1 %vm5574_vm4, %v5573_v23  ;;  %v5490_v27 = vld [vmem:[%s7037_s14 + $0xb0] sm:$0xff]   ;;  %v5492_v31 = vld [vmem:[%s7037_s14 + $0xb8] sm:$0xff]   ;;  %v5494_v36 = vld [vmem:[%s7039_s16 + $0x40] sm:$0xff]  }
 0x6ed   : > { %2600 = vmatprep.mubr.bf16.mxu0 %v2439_v44  ;;  %4971 = vmatprep.subr.bf16.mxu1 %v5573_v23  ;;  %v5493_v32 = vld [vmem:[%s7037_s14 + $0x78] sm:$0xff]   ;;  %v5495_v37 = vld [vmem:[%s7039_s16] sm:$0xff]   ;;  %v5505_v43 = vld [vmem:[%s7039_s16 + $0x28] sm:$0xff]  }
 0x6ee   : > { %2601 = vmatmul.mubr.bf16.vlgmr.msra.gmra.mrb[16].mxu0 %v2438_v42  ;;  %v5500_v38 = vld [vmem:[%s7039_s16 + $0x58] sm:$0xff]   ;;  %v5502_v40 = vld [vmem:[%s7039_s16 + $0x60] sm:$0xff]   ;;  %v5504_v42 = vld [vmem:[%s7039_s16 + $0x68] sm:$0xff]  }
 0x6ef   : > { %4858 = vmatpush3.bf16.msra.mxu0 %v5456_v10  ;;  %2946 = vmatprep.mubr.bf16.mxu0 %v2784_v45  ;;  %v5501_v39 = vld [vmem:[%s7039_s16 + $0x18] sm:$0xff]   ;;  %v5503_v41 = vld [vmem:[%s7039_s16 + $0x20] sm:$0xff]   ;;  %v5506_v44 = vld [vmem:[%s7039_s16 + $0x70] sm:$0xff]  }
 0x6f0   : > { %4972 = vmatpush3.bf16.msra.mxu1 %v5457_v46  ;;  %4859 = vmatprep.subr.bf16.mxu0 %v5458_v47  ;;  %v5507_v10 = vld [vmem:[%s7039_s16 + $0x30] sm:$0xff]   ;;  %v5508_v15 = vld [vmem:[%s7039_s16 + $0x78] sm:$0xff]  }
 0x6f1   : > { %4973 = vmatprep.subr.bf16.mxu1 %v5573_v23 }
 0x6f3   : > { %4860 = vmatpush3.bf16.msra.mxu0 %v5459_v48 }
 0x6f4   : > { %4974 = vmatpush3.bf16.msra.mxu1 %v5460_v49  ;;  %4861 = vmatprep.subr.bf16.mxu0 %v5461_v50 }
 0x6f5   : > { %4975 = vmatprep.subr.bf16.mxu1 %v5573_v23 }
 0x6f7   : > { %4862 = vmatpush3.bf16.msra.mxu0 %v5462_v51 }
 0x6f8   : > { %4976 = vmatpush3.bf16.msra.mxu1 %v5463_v52  ;;  %4863 = vmatprep.subr.bf16.mxu0 %v5464_v53 }
 0x6f9   : > { %4977 = vmatprep.subr.bf16.mxu1 %v5573_v23 }
 0x6fb   : > { %4864 = vmatpush3.bf16.msra.mxu0 %v5465_v54 }
 0x6fc   : > { %4978 = vmatpush3.bf16.msra.mxu1 %v5466_v56  ;;  %4865 = vmatprep.subr.bf16.mxu0 %v5467_v55 }
 0x6fd   : > { %4979 = vmatprep.subr.bf16.mxu1 %v5573_v23 }
 0x6ff   : > { %4866 = vmatpush3.bf16.msra.mxu0 %v5468_v57 }
 0x700   : > { %4980 = vmatpush3.bf16.msra.mxu1 %v5469_v59  ;;  %4867 = vmatprep.subr.bf16.mxu0 %v5470_v60 }
 0x701   : > { %4981 = vmatprep.subr.bf16.mxu1 %v5573_v23 }
 0x703   : > { %4868 = vmatpush3.bf16.msra.mxu0 %v5471_v61 }
 0x704   : > { %4982 = vmatpush3.bf16.msra.mxu1 %v5472_v62  ;;  %4869 = vmatprep.subr.bf16.mxu0 %v5473_v63 }
 0x705   : > { %4983 = vmatprep.subr.bf16.mxu1 %v5573_v23 }
 0x707   : > { %4870 = vmatpush3.bf16.msra.mxu0 %v5474_v0 }
 0x708   : > { %4984 = vmatpush3.bf16.msra.mxu1 %v5475_v58  ;;  %4871 = vmatprep.subr.bf16.mxu0 %v5476_v1 }
 0x709   : > { %5009 = vmatprep.subr.bf16.mxu1 %v5573_v23 }
 0x70b   : > { %4872 = vmatpush3.bf16.msra.mxu0 %v5477_v2  ;;  %4986 = vmatmul.mubr.bf16.vlgmr.msra.gmra.mrb[16].mxu1 %v2957_v33  ;;  %v5483_v33 = vld [vmem:[%s7037_s14 + $0x50] sm:$0xff]  }
 0x70c   : > { %5010 = vmatpush3.bf16.msra.mxu1 %v5478_v4  ;;  %4989 = vmatprep.subr.bf16.mxu0 %v5573_v23 }
 0x70d   : > { %5011 = vmatprep.subr.bf16.mxu1 %v5573_v23  ;;  %5025 = vmatprep.mubr.msk.bf16.mxu1 %vm5574_vm4, %v5573_v23 }
 0x70e   : > { %2947 = vmatmul.mubr.bf16.vlgmr.msra.gmra.mrb[20].mxu0 %v2783_v35  ;;  %v5509_v35 = vld [vmem:[%s7039_s16 + $0x38] sm:$0xff]  }
 0x70f   : > { %4990 = vmatpush3.bf16.msra.mxu0 %v5479_v5  ;;  %5005 = vmatprep.mubr.msk.bf16.mxu0 %vm5574_vm4, %v5573_v23 }
 0x710   : > { %5012 = vmatpush3.bf16.msra.mxu1 %v5480_v7  ;;  %4991 = vmatprep.subr.bf16.mxu0 %v5573_v23 }
 0x711   : > { %5013 = vmatprep.subr.bf16.mxu1 %v5573_v23 }
 0x713   : > { %4992 = vmatpush3.bf16.msra.mxu0 %v5481_v18 }
 0x714   : > { %5014 = vmatpush3.bf16.msra.mxu1 %v5482_v19  ;;  %4993 = vmatprep.subr.bf16.mxu0 %v5573_v23 }
 0x715   : > { %5015 = vmatprep.subr.bf16.mxu1 %v5573_v23 }
 0x717   : > { %4994 = vmatpush3.bf16.msra.mxu0 %v5483_v33 }
 0x718   : > { %5016 = vmatpush3.bf16.msra.mxu1 %v5484_v9  ;;  %4995 = vmatprep.subr.bf16.mxu0 %v5573_v23 }
 0x719   : > { %5017 = vmatprep.subr.bf16.mxu1 %v5573_v23 }
 0x71b   : > { %4996 = vmatpush3.bf16.msra.mxu0 %v5485_v11 }
 0x71c   : > { %5018 = vmatpush3.bf16.msra.mxu1 %v5486_v12  ;;  %4997 = vmatprep.subr.bf16.mxu0 %v5573_v23 }
 0x71d   : > { %5019 = vmatprep.subr.bf16.mxu1 %v5573_v23 }
 0x71f   : > { %4998 = vmatpush3.bf16.msra.mxu0 %v5487_v13 }
 0x720   : > { %5020 = vmatpush3.bf16.msra.mxu1 %v5488_v20  ;;  %4999 = vmatprep.subr.bf16.mxu0 %v5573_v23 }
 0x721   : > { %5021 = vmatprep.subr.bf16.mxu1 %v5573_v23 }
 0x723   : > { %5000 = vmatpush3.bf16.msra.mxu0 %v5489_v22 }
 0x724   : > { %5022 = vmatpush3.bf16.msra.mxu1 %v5490_v27  ;;  %5001 = vmatprep.subr.bf16.mxu0 %v5573_v23 }
 0x725   : > { %5023 = vmatprep.subr.bf16.mxu1 %v5573_v23 }
 0x727   : > { %5002 = vmatpush3.bf16.msra.mxu0 %v5491_v28 }
 0x728   : > { %5024 = vmatpush3.bf16.msra.mxu1 %v5492_v31  ;;  %5003 = vmatprep.subr.bf16.mxu0 %v5573_v23 }
 0x729   : > { %5049 = vmatprep.subr.bf16.mxu1 %v5573_v23 }
 0x72b   : > { %5004 = vmatpush3.bf16.msra.mxu0 %v5493_v32  ;;  %5026 = vmatmul.mubr.bf16.vlgmr.msra.gmra.mrb[20].mxu1 %v3171_v34  ;;  %v5499_v34 = vld [vmem:[%s7039_s16 + $0x10] sm:$0xff]  }
 0x72c   : > { %5029 = vmatprep.subr.bf16.mxu0 %v5573_v23  ;;  %5065 = vmatprep.mubr.msk.bf16.mxu1 %vm5574_vm4, %v5573_v23 }
 0x72d   : > { %5050 = vmatpush3.bf16.msra.mxu1 %v5494_v36 }
 0x72e   : > { %5006 = vmatmul.mubr.bf16.vlgmr.msra.gmra.mrb[24].mxu0 %v6023_v14  ;;  %v5497_v14 = vld [vmem:[%s7039_s16 + $0x8] sm:$0xff]   ;;  %5051 = vmatprep.subr.bf16.mxu1 %v5573_v23 }
 0x72f   : > { %5045 = vmatprep.mubr.msk.bf16.mxu0 %vm5574_vm4, %v5573_v23  ;;  %5030 = vmatpush3.bf16.msra.mxu0 %v5495_v37 }
 0x730   : > { %5031 = vmatprep.subr.bf16.mxu0 %v5573_v23 }
 0x731   : > { %5052 = vmatpush3.bf16.msra.mxu1 %v5496_v16 }
 0x732   : > { %5053 = vmatprep.subr.bf16.mxu1 %v5573_v23 }
 0x733   : > { %5032 = vmatpush3.bf16.msra.mxu0 %v5497_v14 }
 0x734   : > { %5033 = vmatprep.subr.bf16.mxu0 %v5573_v23 }
 0x735   : > { %5054 = vmatpush3.bf16.msra.mxu1 %v5498_v17  ;;  %v4702_v17 = vld [vmem:[%s7038_s15] ss:$0 sm:$0xff] }
 0x736   : > { %5055 = vmatprep.subr.bf16.mxu1 %v5573_v23 }
 0x737   : > { %5034 = vmatpush3.bf16.msra.mxu0 %v5499_v34 }
 0x738   : > { %5035 = vmatprep.subr.bf16.mxu0 %v5573_v23 }
 0x739   : > { %5056 = vmatpush3.bf16.msra.mxu1 %v5500_v38 }
 0x73a   : > { %5057 = vmatprep.subr.bf16.mxu1 %v5573_v23 }
 0x73b   : > { %5036 = vmatpush3.bf16.msra.mxu0 %v5501_v39 }
 0x73c   : > { %5037 = vmatprep.subr.bf16.mxu0 %v5573_v23 }
 0x73d   : > { %5058 = vmatpush3.bf16.msra.mxu1 %v5502_v40 }
 0x73e   : > { %5059 = vmatprep.subr.bf16.mxu1 %v5573_v23 }
 0x73f   : > { %5038 = vmatpush3.bf16.msra.mxu0 %v5503_v41 }
 0x740   : > { %5039 = vmatprep.subr.bf16.mxu0 %v5573_v23 }
 0x741   : > { %5060 = vmatpush3.bf16.msra.mxu1 %v5504_v42 }
 0x742   : > { %5061 = vmatprep.subr.bf16.mxu1 %v5573_v23 }
 0x743   : > { %5040 = vmatpush3.bf16.msra.mxu0 %v5505_v43 }
 0x744   : > { %5041 = vmatprep.subr.bf16.mxu0 %v5573_v23 }
 0x745   : > { %5062 = vmatpush3.bf16.msra.mxu1 %v5506_v44 }
 0x746   : > { %5063 = vmatprep.subr.bf16.mxu1 %v5573_v23 }
 0x747   : > { %5042 = vmatpush3.bf16.msra.mxu0 %v5507_v10 }
 0x748   : > { %5043 = vmatprep.subr.bf16.mxu0 %v5573_v23 }
 0x749   : > { %5064 = vmatpush3.bf16.msra.mxu1 %v5508_v15 }
 0x74a   : > { %3731 = vmatprep.subr.bf16.mxu1 %v5570_v3 }
 0x74b   : > { %5044 = vmatpush3.bf16.msra.mxu0 %v5509_v35 }
 0x74c   : > { %5069 = vmatprep.subr.bf16.mxu0 %v5573_v23 }
 0x7be   : > { %v4851_v45 = vpop.f32.mrb[12].mxu1 }
 0x7bf   : > { %v4852_v46 = vpop.f32.mrb[13].mxu1 }
 0x7c0   : > { %v4853_v47 = vadd.f32 %v4852_v46, %v4851_v45  ;;  %v4854_v48 = vpop.f32.mrb[14].mxu1 }
 0x7c1   : > { %v4829_v49 = vpop.f32.mrb[16].mxu0  ;;  %v4855_v50 = vpop.f32.mrb[15].mxu1 }
 0x7c2   : > { %v4856_v51 = vadd.f32 %v4855_v50, %v4854_v48  ;;  %v4830_v52 = vpop.f32.mrb[17].mxu0 }
 0x7c3   : > { %v4831_v53 = vadd.f32 %v4830_v52, %v4829_v49  ;;  %v4832_v54 = vpop.f32.mrb[18].mxu0 }
 0x7c4   : > { %v4833_v56 = vpop.f32.mrb[19].mxu0 }
 0x7c5   : > { %v2609_v55 = vmul.f32 %v4831_v53, %v5761_v29  ;;  %v4834_v57 = vadd.f32 %v4833_v56, %v4832_v54  ;;  %v5511_v54 = vld [vmem:[%s7039_s16 + $0x80] sm:$0xff]  }
 0x7c7   : > { %v3280_v59 = vadd.f32 %v4853_v47, %v2609_v55  ;;  %v2610_v60 = vmul.f32 %v4834_v57, %v5763_v30  ;;  %v5510_v47 = vld [vmem:[%s7040_s17] sm:$0xff]  }
 0x7c9   : > { %v3281_v61 = vadd.f32 %v4856_v51, %v2610_v60 }
 0x7de   : > { %v3056_v62 = vpop.f32.mrb[16].mxu1 }
 0x7df   : > { %v4987_v63 = vpop.f32.mrb[17].mxu1  ;;  %v3063_v33 = vmul.f32 %v3056_v62, %v5761_v29  ;;  %v5515_v62 = vld [vmem:[%s7039_s16 + $0x90] sm:$0xff]  }
 0x7e0   : > { %v3059_v0 = vpop.f32.mrb[18].mxu1  ;;  %v5516_v63 = vld [vmem:[%s7040_s17 + $0x18] sm:$0xff]  }
 0x7e1   : > { %v4873_v58 = vpop.f32.mrb[20].mxu0  ;;  %v4988_v1 = vpop.f32.mrb[19].mxu1  ;;  %v3064_v12 = vmul.f32 %v3059_v0, %v5763_v30  ;;  %v5517_v0 = vld [vmem:[%s7039_s16 + $0x98] sm:$0xff]  }
 0x7e2   : > { %v4874_v2 = vpop.f32.mrb[21].mxu0  ;;  %v5519_v1 = vld [vmem:[%s7039_s16 + $0xa0] sm:$0xff]  }
 0x7e3   : > { %v4875_v4 = vadd.f32 %v4874_v2, %v4873_v58  ;;  %v4876_v5 = vpop.f32.mrb[22].mxu0  ;;  %v5518_v58 = vld [vmem:[%s7040_s17 + $0x20] sm:$0xff]   ;;  %v5520_v2 = vld [vmem:[%s7040_s17 + $0x28] sm:$0xff]  }
 0x7e4   : > { %v4877_v7 = vpop.f32.mrb[23].mxu0 }
 0x7e5   : > { %v2955_v18 = vmul.f32 %v4875_v4, %v5751_v24  ;;  %v4878_v19 = vadd.f32 %v4877_v7, %v4876_v5  ;;  %v5521_v4 = vld [vmem:[%s7039_s16 + $0xa8] sm:$0xff]   ;;  %v5522_v5 = vld [vmem:[%s7040_s17 + $0x30] sm:$0xff]  }
 0x7e6   : > { %v5523_v7 = vld [vmem:[%s7039_s16 + $0xb0] sm:$0xff]  }
 0x7e7   : > { %v2956_v9 = vmul.f32 %v4878_v19, %v5757_v25  ;;  %v3282_v11 = vadd.f32 %v3280_v59, %v2955_v18  ;;  %v5512_v59 = vld [vmem:[%s7040_s17 + $0x8] sm:$0xff]   ;;  %v5524_v18 = vld [vmem:[%s7040_s17 + $0x38] sm:$0xff]  }
 0x7e8   : > { %v5525_v19 = vld [vmem:[%s7039_s16 + $0xb8] sm:$0xff]  }
 0x7e9   : > { %v3284_v13 = vadd.f32 %v3282_v11, %v3063_v33  ;;  %v3283_v20 = vadd.f32 %v3281_v61, %v2956_v9  ;;  %v5513_v61 = vld [vmem:[%s7039_s16 + $0x88] sm:$0xff]   ;;  %v5526_v33 = vld [vmem:[%s7040_s17 + $0x40] sm:$0xff]  }
 0x7ea   : > { %v5527_v9 = vld [vmem:[%s7043_s20] sm:$0xff]   ;;  %v5528_v11 = vld [vmem:[%s7040_s17 + $0x48] sm:$0xff]  }
 0x7eb   : > { %v3285_v22 = vadd.f32 %v3283_v20, %v3064_v12  ;;  %v5529_v12 = vld [vmem:[%s7043_s20 + $0x8] sm:$0xff]   ;;  %v5531_v20 = vld [vmem:[%s7043_s20 + $0x10] sm:$0xff]  }
 0x7fe   : > { %v3271_v27 = vpop.f32.mrb[20].mxu1 }
 0x7ff   : > { %v5027_v28 = vpop.f32.mrb[21].mxu1  ;;  %v3278_v37 = vmul.f32 %v3271_v27, %v5751_v24  ;;  %v5533_v27 = vld [vmem:[%s7043_s20 + $0x18] sm:$0xff]  }
 0x800   : > { %v3274_v31 = vpop.f32.mrb[22].mxu1  ;;  %v5534_v28 = vld [vmem:[%s7043_s20 + $0x20] sm:$0xff]  }
 0x801   : > { %v3164_v32 = vpop.f32.mrb[24].mxu0  ;;  %v5028_v36 = vpop.f32.mrb[23].mxu1  ;;  %v3279_v38 = vmul.f32 %v3274_v31, %v5757_v25  ;;  %v5535_v31 = vld [vmem:[%s7043_s20 + $0x28] sm:$0xff]  }
 0x802   : > { %v3286_v16 = vadd.f32 %v3284_v13, %v3164_v32  ;;  %v5007_v14 = vpop.f32.mrb[25].mxu0  ;;  %v5530_v13 = vld [vmem:[%s7040_s17 + $0x50] sm:$0xff]   ;;  %v5537_v32 = vld [vmem:[%s7042_s19 + $0x8] sm:$0xff]  }
 0x803   : > { %v3167_v34 = vpop.f32.mrb[26].mxu0  ;;  %v5538_v36 = vld [vmem:[%s7042_s19 + $0x10] sm:$0xff]  }
 0x804   : > { %v3288_v39 = vadd.f32 %v3286_v16, %v3278_v37  ;;  %v3287_v40 = vadd.f32 %v3285_v22, %v3167_v34  ;;  %v5008_v41 = vpop.f32.mrb[27].mxu0  ;;  %v5532_v22 = vld [vmem:[%s7040_s17 + $0x58] sm:$0xff]   ;;  %v5540_v37 = vld [vmem:[%s7042_s19 + $0x20] sm:$0xff]   ;;  %v5541_v16 = vld [vmem:[%s7042_s19 + $0x28] sm:$0xff]  }
 0x805   : > { %v5542_v14 = vld [vmem:[%s7042_s19 + $0x30] sm:$0xff]   ;;  %v5544_v34 = vld [vmem:[%s7042_s19 + $0x40] sm:$0xff]  }
 0x806   : > { %v3297_v42 = vadd.f32 %v4702_v17, %v3288_v39  ;;  %v3289_v43 = vadd.f32 %v3287_v40, %v3279_v38  ;;  %v5545_v38 = vld [vmem:[%s7042_s19 + $0x48] sm:$0xff]   ;;  %v5546_v39 = vld [vmem:[%s7042_s19 + $0x50] sm:$0xff]  }
 0x808   : > { %v3299_v44 = vmul.f32 0.01, %v3297_v42  ;;  %v3298_v10 = vadd.f32 %v4702_v17, %v3289_v43  ;;  %v5543_v17 = vld [vmem:[%s7042_s19 + $0x38] sm:$0xff]  }
 0x80a   : > { %v3301_v15 = vmax.f32 %v3297_v42, %v3299_v44  ;;  %v3300_v35 = vmul.f32 0.01, %v3298_v10 }
 0x80c   : > { %v3302_v45 = vmax.f32 %v3298_v10, %v3300_v35  ;;  %v3303_v46 = vrot.slane %v3301_v15, 7  ;;  %v3307_v48 = vrot.slane %v3301_v15, 1 }
 0x80e   : > { %v3304_v49 = vrot.slane %v3302_v45, 7  ;;  %v3308_v50 = vrot.slane %v3302_v45, 1  ;;  %v3419_v51 = vpack.c.bf16 %v3302_v45, %v3301_v15 }
 0x810   : > { %5066 = vmatmul.mubr.bf16.vlgmr.msra.gmra.mrb[24].mxu1 %v3419_v51  ;;  %v3305_v52 = vsel %vm752_vm1, %v3303_v46, %v3304_v49  ;;  %v3306_v53 = vsel %vm752_vm1, %v3304_v49, %v3303_v46  ;;  %v3309_v56 = vsel %vm757_vm0, %v3307_v48, %v3308_v50  ;;  %v3310_v55 = vsel %vm757_vm0, %v3308_v50, %v3307_v48 }
 0x811   : > { %3732 = vmatpush1.bf16.msra.mxu1 %v5510_v47  ;;  %4771 = vmatprep.mubr.msk.bf16.mxu1 %vm908_vm9, %v5898_v8  ;;  %v3311_v57 = vpack.c.bf16 %v3305_v52, %v3306_v53  ;;  %v3526_v60 = vpack.c.bf16 %v3310_v55, %v3309_v56  ;;  %v5514_v8 = vld [vmem:[%s7040_s17 + $0x10] sm:$0xff]  }
 0x812   : > { %3733 = vmatprep.subr.bf16.mxu1 %v5570_v3 }
 0x813   : > { %5046 = vmatmul.mubr.bf16.vlgmr.msra.gmra.mrb[28].mxu0 %v3311_v57  ;;  %v4772_v57 = vld [vmem:[%s7041_s18] ss:$0 sm:$0xff] }
 0x814   : > { %5070 = vmatpush3.bf16.msra.mxu0 %v5511_v54  ;;  %5085 = vmatprep.mubr.msk.bf16.mxu0 %vm5574_vm4, %v5573_v23 }
 0x815   : > { %3734 = vmatpush1.bf16.msra.mxu1 %v5512_v59  ;;  %5071 = vmatprep.subr.bf16.mxu0 %v5573_v23  ;;  %v5547_v59 = vld [vmem:[%s7042_s19 + $0x58] sm:$0xff]  }
 0x816   : > { %3735 = vmatprep.subr.bf16.mxu1 %v5570_v3 }
 0x818   : > { %5072 = vmatpush3.bf16.msra.mxu0 %v5513_v61 }
 0x819   : > { %3736 = vmatpush1.bf16.msra.mxu1 %v5514_v8  ;;  %5073 = vmatprep.subr.bf16.mxu0 %v5573_v23 }
 0x81a   : > { %3737 = vmatprep.subr.bf16.mxu1 %v5570_v3 }
 0x81c   : > { %5074 = vmatpush3.bf16.msra.mxu0 %v5515_v62 }
 0x81d   : > { %3738 = vmatpush1.bf16.msra.mxu1 %v5516_v63  ;;  %5075 = vmatprep.subr.bf16.mxu0 %v5573_v23 }
 0x81e   : > { %3739 = vmatprep.subr.bf16.mxu1 %v5570_v3 }
 0x820   : > { %5076 = vmatpush3.bf16.msra.mxu0 %v5517_v0 }
 0x821   : > { %3740 = vmatpush1.bf16.msra.mxu1 %v5518_v58  ;;  %5077 = vmatprep.subr.bf16.mxu0 %v5573_v23 }
 0x822   : > { %3741 = vmatprep.subr.bf16.mxu1 %v5570_v3 }
 0x824   : > { %5078 = vmatpush3.bf16.msra.mxu0 %v5519_v1 }
 0x825   : > { %3742 = vmatpush1.bf16.msra.mxu1 %v5520_v2  ;;  %5079 = vmatprep.subr.bf16.mxu0 %v5573_v23 }
 0x826   : > { %3743 = vmatprep.subr.bf16.mxu1 %v5570_v3 }
 0x828   : > { %5080 = vmatpush3.bf16.msra.mxu0 %v5521_v4 }
 0x829   : > { %3744 = vmatpush1.bf16.msra.mxu1 %v5522_v5  ;;  %5081 = vmatprep.subr.bf16.mxu0 %v5573_v23 }
 0x82a   : > { %3745 = vmatprep.subr.bf16.mxu1 %v5570_v3 }
 0x82c   : > { %5082 = vmatpush3.bf16.msra.mxu0 %v5523_v7 }
 0x82d   : > { %3746 = vmatpush1.bf16.msra.mxu1 %v5524_v18  ;;  %5083 = vmatprep.subr.bf16.mxu0 %v5573_v23 }
 0x82e   : > { %3747 = vmatprep.subr.bf16.mxu1 %v5570_v3 }
 0x830   : > { %5084 = vmatpush3.bf16.msra.mxu0 %v5525_v19 }
 0x831   : > { %3748 = vmatpush1.bf16.msra.mxu1 %v5526_v33  ;;  %5089 = vmatprep.subr.bf16.mxu0 %v5573_v23 }
 0x832   : > { %3749 = vmatprep.subr.bf16.mxu1 %v5570_v3 }
 0x833   : > { %5086 = vmatmul.mubr.bf16.vlgmr.msra.gmra.mrb[32].mxu0 %v3526_v60 }
 0x834   : > { %5090 = vmatpush3.bf16.msra.mxu0 %v5527_v9  ;;  %5101 = vmatprep.mubr.msk.bf16.mxu0 %vm5574_vm4, %v5573_v23 }
 0x835   : > { %3750 = vmatpush1.bf16.msra.mxu1 %v5528_v11  ;;  %5091 = vmatprep.subr.bf16.mxu0 %v5573_v23 }
 0x836   : > { %3751 = vmatprep.subr.bf16.mxu1 %v5570_v3 }
 0x838   : > { %5092 = vmatpush3.bf16.msra.mxu0 %v5529_v12 }
 0x839   : > { %3752 = vmatpush1.bf16.msra.mxu1 %v5530_v13  ;;  %5093 = vmatprep.subr.bf16.mxu0 %v5573_v23 }
 0x83a   : > { %3753 = vmatprep.subr.bf16.mxu1 %v5570_v3 }
 0x83c   : > { %5094 = vmatpush3.bf16.msra.mxu0 %v5531_v20 }
 0x83d   : > { %3754 = vmatpush1.bf16.msra.mxu1 %v5532_v22  ;;  %5095 = vmatprep.subr.bf16.mxu0 %v5573_v23 }
 0x83e   : > { %4003 = vmatprep.subr.bf16.mxu1 %v5570_v3 }
 0x840   : > { %3764 = vmatmul.mubr.bf16.vlgmr.msra.gmra.mrb[28].mxu1 %v5921_v21  ;;  %5096 = vmatpush3.bf16.msra.mxu0 %v5533_v27  ;;  %v5536_v21 = vld [vmem:[%s7042_s19] sm:$0xff]  }
 0x841   : > { %5097 = vmatprep.subr.bf16.mxu0 %v5573_v23  ;;  %4004 = vmatpush1.bf16.msra.mxu1 %v5536_v21 }
 0x842   : > { %4005 = vmatprep.subr.bf16.mxu1 %v5570_v3 }
 0x844   : > { %5098 = vmatpush3.bf16.msra.mxu0 %v5534_v28 }
 0x845   : > { %5099 = vmatprep.subr.bf16.mxu0 %v5573_v23  ;;  %4006 = vmatpush1.bf16.msra.mxu1 %v5537_v32 }
 0x846   : > { %4007 = vmatprep.subr.bf16.mxu1 %v5570_v3 }
 0x848   : > { %5100 = vmatpush3.bf16.msra.mxu0 %v5535_v31 }
 0x849   : > { %5105 = vmatprep.subr.bf16.mxu0 %v5573_v23  ;;  %4008 = vmatpush1.bf16.msra.mxu1 %v5538_v36 }
 0x84a   : > { %4009 = vmatprep.subr.bf16.mxu1 %v5570_v3 }
 0x84b   : > { %5102 = vmatmul.mubr.msk.bf16.vlgmr.msra.gmra.mrb[36].mxu0 %vm967_vm10, %v5811_v26  ;;  %v5539_v26 = vld [vmem:[%s7042_s19 + $0x18] sm:$0xff]  }
 0x84c   : > { %5117 = vmatprep.mubr.msk.bf16.mxu0 %vm5574_vm4, %v5573_v23 }
 0x84d   : > { %4010 = vmatpush1.bf16.msra.mxu1 %v5539_v26 }
 0x84e   : > { %4011 = vmatprep.subr.bf16.mxu1 %v5570_v3 }
 0x851   : > { %4012 = vmatpush1.bf16.msra.mxu1 %v5540_v37 }
 0x852   : > { %4013 = vmatprep.subr.bf16.mxu1 %v5570_v3 }
 0x855   : > { %4014 = vmatpush1.bf16.msra.mxu1 %v5541_v16 }
 0x856   : > { %4015 = vmatprep.subr.bf16.mxu1 %v5570_v3 }
 0x859   : > { %4016 = vmatpush1.bf16.msra.mxu1 %v5542_v14 }
 0x85a   : > { %4017 = vmatprep.subr.bf16.mxu1 %v5570_v3 }
 0x85d   : > { %4018 = vmatpush1.bf16.msra.mxu1 %v5543_v17 }
 0x85e   : > { %4019 = vmatprep.subr.bf16.mxu1 %v5570_v3 }
 0x861   : > { %4020 = vmatpush1.bf16.msra.mxu1 %v5544_v34 }
 0x862   : > { %4021 = vmatprep.subr.bf16.mxu1 %v5570_v3 }
 0x865   : > { %4022 = vmatpush1.bf16.msra.mxu1 %v5545_v38 }
 0x866   : > { %4023 = vmatprep.subr.bf16.mxu1 %v5570_v3 }
 0x869   : > { %4024 = vmatpush1.bf16.msra.mxu1 %v5546_v39 }
 0x86a   : > { %4025 = vmatprep.subr.bf16.mxu1 %v5570_v3 }
 0x86d   : > { %4026 = vmatpush1.bf16.msra.mxu1 %v5547_v59 }
 0x8e3   : > { %v3519_v40 = vpop.f32.mrb[24].mxu1 }
 0x8e4   : > { %v5067_v41 = vpop.f32.mrb[25].mxu1 }
 0x8e5   : > { %v3522_v42 = vpop.f32.mrb[26].mxu1  ;;  %v5549_v41 = vld [vmem:[%s7045_s22 + $0x8] sm:$0xff]  }
 0x8e6   : > { %v3410_v43 = vpop.f32.mrb[28].mxu0  ;;  %v5068_v44 = vpop.f32.mrb[27].mxu1 }
 0x8e7   : > { %v3417_v10 = vmul.f32 %v3410_v43, %v5761_v29  ;;  %v5047_v15 = vpop.f32.mrb[29].mxu0  ;;  %v5551_v43 = vld [vmem:[%s7045_s22 + $0x18] sm:$0xff]  }
 0x8e8   : > { %v3413_v35 = vpop.f32.mrb[30].mxu0 }
 0x8e9   : > { %v3772_v45 = vadd.f32 %v3519_v40, %v3417_v10  ;;  %v3418_v46 = vmul.f32 %v3413_v35, %v5763_v30  ;;  %v5048_v47 = vpop.f32.mrb[31].mxu0  ;;  %v5548_v40 = vld [vmem:[%s7045_s22] sm:$0xff]  }
 0x8ea   : > { %5106 = vmatpush3.bf16.msra.mxu0 %v5548_v40  ;;  %v4793_v10 = vld [vmem:[%s7044_s21] ss:$0 sm:$0xff] }
 0x8eb   : > { %v3773_v48 = vadd.f32 %v3522_v42, %v3418_v46  ;;  %5107 = vmatprep.subr.bf16.mxu0 %v5573_v23  ;;  %v5550_v42 = vld [vmem:[%s7045_s22 + $0x10] sm:$0xff]  }
 0x8ee   : > { %5108 = vmatpush3.bf16.msra.mxu0 %v5549_v41 }
 0x8ef   : > { %5109 = vmatprep.subr.bf16.mxu0 %v5573_v23 }
 0x8f2   : > { %5110 = vmatpush3.bf16.msra.mxu0 %v5550_v42 }
 0x8f3   : > { %5111 = vmatprep.subr.bf16.mxu0 %v5573_v23 }
 0x8f6   : > { %5112 = vmatpush3.bf16.msra.mxu0 %v5551_v43 }
 0x8f7   : > { %5113 = vmatprep.subr.bf16.mxu0 %v5573_v23 }
 0x906   : > { %v3626_v49 = vpop.f32.mrb[32].mxu0 }
 0x907   : > { %v3633_v50 = vmul.f32 %v3626_v49, %v5751_v24  ;;  %v5087_v51 = vpop.f32.mrb[33].mxu0 }
 0x908   : > { %v3629_v52 = vpop.f32.mrb[34].mxu0 }
 0x909   : > { %v3634_v3 = vmul.f32 %v3629_v52, %v5757_v25  ;;  %v5088_v53 = vpop.f32.mrb[35].mxu0  ;;  %v3774_v54 = vadd.f32 %v3772_v45, %v3633_v50  ;;  %v5552_v45 = vld [vmem:[%s7045_s22 + $0x20] sm:$0xff]   ;;  %v5553_v52 = vld [vmem:[%s7045_s22 + $0x28] sm:$0xff]  }
 0x90a   : > { %5114 = vmatpush3.bf16.msra.mxu0 %v5552_v45 }
 0x90b   : > { %v3775_v56 = vadd.f32 %v3773_v48, %v3634_v3  ;;  %5115 = vmatprep.subr.bf16.mxu0 %v5573_v23 }
 0x90e   : > { %5116 = vmatpush3.bf16.msra.mxu0 %v5553_v52 }
 0x913   : > { %v3765_v55 = vpop.f32.mrb[28].mxu1 }
 0x914   : > { %v3776_v60 = vadd.f32 %v3774_v54, %v3765_v55  ;;  %v3767_v61 = vpop.f32.mrb[29].mxu1 }
 0x915   : > { %v3768_v8 = vpop.f32.mrb[30].mxu1 }
 0x916   : > { %v3785_v62 = vadd.f32 %v4772_v57, %v3776_v60  ;;  %v3777_v63 = vadd.f32 %v3775_v56, %v3768_v8  ;;  %v3770_v0 = vpop.f32.mrb[31].mxu1 }
 0x918   : > { %v3787_v58 = vmul.f32 0.01, %v3785_v62  ;;  %v3786_v1 = vadd.f32 %v4772_v57, %v3777_v63 }
 0x91a   : > { %v3789_v2 = vmax.f32 %v3785_v62, %v3787_v58  ;;  %v3788_v4 = vmul.f32 0.01, %v3786_v1 }
 0x91c   : > { %v3790_v5 = vmax.f32 %v3786_v1, %v3788_v4  ;;  %v3791_v7 = vrot.slane %v3789_v2, 7  ;;  %v3795_v18 = vrot.slane %v3789_v2, 1 }
 0x91e   : > { %v3792_v19 = vrot.slane %v3790_v5, 7  ;;  %v3796_v33 = vrot.slane %v3790_v5, 1  ;;  %v3921_v9 = vpop.f32.mrb[36].mxu0  ;;  %v5172_v11 = vpack.i.bf16 %v3790_v5, %v3789_v2 }
 0x91f   : > { %v5103_v12 = vpop.f32.mrb[37].mxu0 }
 0x920   : > { %5173 = vrot.lane.b32.xlu1 %v5172_v11, %s7075_s28  ;;  %v3924_v13 = vpop.f32.mrb[38].mxu0  ;;  %v3797_v20 = vsel %vm757_vm0, %v3795_v18, %v3796_v33  ;;  %v3798_v22 = vsel %vm757_vm0, %v3796_v33, %v3795_v18  ;;  %v3793_v27 = vsel %vm752_vm1, %v3791_v7, %v3792_v19  ;;  %v3794_v28 = vsel %vm752_vm1, %v3792_v19, %v3791_v7 }
 0x921   : > { %v5104_v31 = vpop.f32.mrb[39].mxu0  ;;  %v3801_v21 = vmul.f32 %v3797_v20, %v5751_v24  ;;  %v3802_v32 = vmul.f32 %v3798_v22, %v5757_v25  ;;  %v3799_v14 = vmul.f32 %v3794_v28, %v5761_v29  ;;  %v3800_v17 = vmul.f32 %v3793_v27, %v5763_v30 }
 0x923   : > { %v3814_v36 = vpack.c.bf16 %v3802_v32, %v3801_v21 }
 0x925   : > { %4792 = vmatprep.mubr.msk.bf16.mxu1 %vm908_vm9, %v3814_v36 }
 0x992   : > { %v5174_v26 = vpop.permute.xlu1 %5173 }
 0x993   : > { %v5176_v37 = vunpack.i.h.bf16 %v5174_v26  ;;  %v5175_v16 = vunpack.i.l.bf16 %v5174_v26 }
 0x995   : > { %v3811_v34 = vsel %vm908_vm9, %v3799_v14, %v5175_v16  ;;  %v3812_v38 = vsel %vm908_vm9, %v3800_v17, %v5176_v37 }
 0x996   : > { %v3813_v39 = vpack.c.bf16 %v3812_v38, %v3811_v34 }
 0x998   : > { %4036 = vmatmul.mubr.bf16.vlgmr.msra.gmra.mrb[32].mxu1 %v3813_v39 }
 0xa6b   : > { %v4037_v44 = vpop.f32.mrb[32].mxu1 }
 0xa6c   : > { %v4038_v15 = vadd.f32 %v4037_v44, %v3921_v9  ;;  %v4039_v35 = vpop.f32.mrb[33].mxu1 }
 0xa6d   : > { %v4040_v46 = vpop.f32.mrb[34].mxu1 }
 0xa6e   : > { %v4051_v47 = vadd.f32 %v4793_v10, %v4038_v15  ;;  %v4041_v48 = vadd.f32 %v4040_v46, %v3924_v13  ;;  %v4042_v49 = vpop.f32.mrb[35].mxu1 }
 0xa70   : > { %v4053_v50 = vmul.f32 0.01, %v4051_v47  ;;  %v4052_v51 = vadd.f32 %v4793_v10, %v4041_v48 }
 0xa72   : > { %v4055_v3 = vmax.f32 %v4051_v47, %v4053_v50  ;;  %v4054_v53 = vmul.f32 0.01, %v4052_v51 }
 0xa74   : > { %v4056_v54 = vmax.f32 %v4052_v51, %v4054_v53  ;;  %v4057_v56 = vrot.slane %v4055_v3, 7  ;;  %v4061_v55 = vrot.slane %v4055_v3, 1 }
 0xa76   : > { %v4058_v57 = vrot.slane %v4056_v54, 7  ;;  %v4062_v59 = vrot.slane %v4056_v54, 1  ;;  %v5177_v60 = vpack.i.bf16 %v4056_v54, %v4055_v3 }
 0xa78   : > { %5178 = vrot.lane.b32.xlu0 %v5177_v60, %s7077_s0  ;;  %v4063_v23 = vsel %vm757_vm0, %v4061_v55, %v4062_v59  ;;  %v4064_v61 = vsel %vm757_vm0, %v4062_v59, %v4061_v55  ;;  %v4059_v8 = vsel %vm752_vm1, %v4057_v56, %v4058_v57  ;;  %v4060_v62 = vsel %vm752_vm1, %v4058_v57, %v4057_v56 }
 0xa79   : > { %v4067_v63 = vmul.f32 %v4063_v23, %v5751_v24  ;;  %v4068_v0 = vmul.f32 %v4064_v61, %v5757_v25  ;;  %v4065_v5 = vmul.f32 %v4060_v62, %v5761_v29  ;;  %v4066_v7 = vmul.f32 %v4059_v8, %v5763_v30  ;;  %v4794_v29 = vld [vmem:[%s7046_s23] ss:$0 sm:$0xff] }
 0xa7b   : > { %v5182_v58 = vpack.i.bf16 %v4068_v0, %v4067_v63 }
 0xa7d   : > { %5183 = vrot.lane.b32.xlu1 %v5182_v58, %s7075_s28 }
 0xaea   : > { %v5179_v1 = vpop.permute.xlu0 %5178 }
 0xaeb   : > { %v5181_v2 = vunpack.i.h.bf16 %v5179_v1  ;;  %v5180_v4 = vunpack.i.l.bf16 %v5179_v1 }
 0xaed   : > { %v4085_v6 = vsel %vm905_vm8, %v4065_v5, %v5180_v4  ;;  %v4086_v9 = vsel %vm905_vm8, %v4066_v7, %v5181_v2 }
 0xaef   : > { %v5184_v18 = vpop.permute.xlu1 %5183 }
 0xaf0   : > { %v5186_v19 = vunpack.i.h.bf16 %v5184_v18  ;;  %v5185_v33 = vunpack.i.l.bf16 %v5184_v18 }
 0xaf2   : > { %v4087_v24 = vsel %vm908_vm9, %v4085_v6, %v5185_v33  ;;  %v4088_v25 = vsel %vm908_vm9, %v4086_v9, %v5186_v19 }
 0xaf3   : > { %v4089_v11 = vpack.c.bf16 %v4088_v25, %v4087_v24 }
 0xaf5   : > { %5118 = vmatmul.mubr.msk.bf16.vlgmr.msra.gmra.mrb[40].mxu0 %vm967_vm10, %v4089_v11 }
 0xbc8   : > { %v4182_v12 = vpop.f32.mrb[40].mxu0 }
 0xbc9   : > { %v4183_v30 = vadd.f32 %v4794_v29, %v4182_v12  ;;  %v5119_v13 = vpop.f32.mrb[41].mxu0 }
 0xbca   : > { %v4185_v20 = vpop.f32.mrb[42].mxu0 }
 0xbcb   : > { %v4189_v22 = vsub.f32 0.0, %v4183_v30  ;;  %v4186_v27 = vadd.f32 %v4794_v29, %v4185_v20  ;;  %v5120_v28 = vpop.f32.mrb[43].mxu0 }
 0xbcd   : > { %v4191_v31 = vmul.f32 1.442695, %v4189_v22  ;;  %v4190_v21 = vsub.f32 0.0, %v4186_v27 }
 0xbcf   : > { %5554 = vpow2.f32 %v4191_v31  ;;  %v4193_v32 = vmul.f32 1.442695, %v4190_v21 }
 0xbd1   : > { %5556 = vpow2.f32 %v4193_v32 }
 0xbd9   : > { %v5555_v36 = vpop.eup %5554 }
 0xbda   : > { %v4195_v26 = vadd.f32 1.0, %v5555_v36 }
 0xbdb   : > { %v5557_v37 = vpop.eup %5556 }
 0xbdc   : > { %5558 = vrcp.f32 %v4195_v26  ;;  %v4196_v16 = vadd.f32 1.0, %v5557_v37 }
 0xbde   : > { %5560 = vrcp.f32 %v4196_v16 }
 0xbe6   : > { %v5559_v14 = vpop.eup %5558 }
 0xbe7   : > { %4202 = vst.msk [vmem:[%s739_s2] sm:$0xff] %vm4201_vm11, %v5559_v14 }
 0xbe8   : > { %v5561_v17 = vpop.eup %5560 }
 0xbe9   : > { %4203 = vst.msk [vmem:[%s739_s2 + $0x8] sm:$0xff] %vm4201_vm11, %v5561_v17 }
 0xbea PF: > { %s34_s5 = sadd.s32 1, %s5568_s5  }
 0xbeb   : > { %p31_p4 = scmp.ge.s32.totalorder %s34_s5, 4  }
 0xbed   :  { %33 = sbr.rel (!%p31_p4) target bundleno = 10 (0xa), region = 156 }

</bundles_post_ra>
